<compile_context>
chip_gen: v7x
topology: tpu7x:2x2x1
jax: 0.10.0
libtpu: 0.0.40
codegen_flags: <defaults>
</compile_context>

<pallas_src>
import jax
import jax.numpy as jnp
from jax.experimental import pallas as pl
from jax.experimental.pallas import tpu as pltpu


# ---- problem sizes (module defaults: hidden_size=64, num_residuals=4) ----
OBS = 16       # obs_size
N_ACT = 8      # n_actions
H = 64         # hidden_size
H2 = 2 * H     # fused (state|action) width = 128 lanes
NUM_RES = 4    # num_residuals
N_LAYERS = 2 * NUM_RES + 2   # entry + 2 per residual block + state_action[0]

TB = 128       # batch tile per grid step (fills MXU rows; use 256 on v6e/v7x)


def critic_kernel(x_ref, w_ref, b_ref, head_ref, out_ref):
    """Fused Critic forward for one batch tile.

    x_ref    : (TB, 2H)  f32   zero-padded [state | action | 0...]
    w_ref    : (N_LAYERS, 2H, 2H) bf16  block-diag / zero-padded weights
                 idx 0            : entry Linear(obs->H) (+) Linear(act->H)
                 idx 1..2*NUM_RES : residual blocks, each weight as blockdiag(W, W)
                 idx N_LAYERS-1   : state_action Linear(2H->H), zero-padded cols
    b_ref    : (N_LAYERS, 1, 2H) f32  matching biases (broadcast in-kernel)
    head_ref : (2, 2H)   f32   row 0 = final Linear(H->1) weight (padded),
                               row 1 = [bias, 0, ...]
    out_ref  : (TB, 1)   f32
    """
    f32, bf16 = jnp.float32, jnp.bfloat16

    def dense(a, idx):
        # bf16 x bf16 MXU matmul with f32 accumulate; bias-add stays f32.
        return jnp.dot(a.astype(bf16), w_ref[idx],
                       preferred_element_type=f32) + b_ref[idx]

    x = x_ref[...]                                       # f32 (TB, 2H)

    # Entry layer: tanh(Linear(state)) | tanh(Linear(action)) in one matmul.
    x = jnp.tanh(dense(x, 0))

    # Shared residual stack applied to both halves at once (block-diag weights).
    for i in range(NUM_RES):                             # static unroll
        h = jnp.tanh(dense(x, 1 + 2 * i))
        h = jnp.tanh(dense(h, 2 + 2 * i))
        x = x + h                                        # residual carry in f32

    # state_action[0]: x IS cat([x_state, x_action], 1), so the concat Linear
    # (2H -> H) is one matmul against the zero-padded (2H, 2H) weight; lanes
    # H..2H-1 come out as tanh(0) = 0 and are killed by the zero-padded head.
    h = jnp.tanh(dense(x, N_LAYERS - 1))

    # state_action[1]: Linear(H -> 1) as a VPU multiply + lane reduction.
    out_ref[...] = (jnp.sum(h * head_ref[0:1, :], axis=-1, keepdims=True)
                    + head_ref[1:2, 0:1])


def critic_forward(x_pad, w_blob, b_blob, head, *, tb=TB):
    b_pad = x_pad.shape[0]
    assert b_pad % tb == 0
    grid = (b_pad // tb,)

    flops = 2 * b_pad * N_LAYERS * H2 * H2 + 2 * b_pad * H2
    transcendentals = b_pad * H2 * N_LAYERS
    bytes_accessed = sum(int(a.size) * a.dtype.itemsize
                         for a in (x_pad, w_blob, b_blob, head)) + b_pad * 4

    return pl.pallas_call(
        critic_kernel,
        out_shape=jax.ShapeDtypeStruct((b_pad, 1), jnp.float32),
        grid_spec=pltpu.PrefetchScalarGridSpec(
            num_scalar_prefetch=0,
            grid=grid,
            in_specs=[
                # batch-tiled activations
                pl.BlockSpec((tb, H2), lambda i: (i, 0)),
                # parameters: constant block index -> DMA'd once, VMEM-resident
                pl.BlockSpec((N_LAYERS, H2, H2), lambda i: (0, 0, 0)),
                pl.BlockSpec((N_LAYERS, 1, H2), lambda i: (0, 0, 0)),
                pl.BlockSpec((2, H2), lambda i: (0, 0)),
            ],
            out_specs=pl.BlockSpec((tb, 1), lambda i: (i, 0)),
        ),
        compiler_params=pltpu.CompilerParams(
            dimension_semantics=("parallel",)),   # megacore split on v7x
        cost_estimate=pl.CostEstimate(flops=flops,
                                      transcendentals=transcendentals,
                                      bytes_accessed=bytes_accessed),
    )(x_pad, w_blob, b_blob, head)


# ----------------------------- parameter setup ------------------------------

def init_params(key):
    """Deterministic init mimicking nn.Linear (uniform(-1/sqrt(fan_in), ...)).

    Weights are stored as (in_features, out_features) so forward is x @ W + b.
    """
    def linear(key, fan_in, fan_out):
        kw, kb = jax.random.split(key)
        bound = 1.0 / jnp.sqrt(fan_in)
        w = jax.random.uniform(kw, (fan_in, fan_out), jnp.float32, -bound, bound)
        b = jax.random.uniform(kb, (1, fan_out), jnp.float32, -bound, bound)
        return w, b

    keys = jax.random.split(key, 4 + 2 * NUM_RES)
    ws, bs = linear(keys[0], OBS, H)           # state  Linear(OBS -> H)
    wa, ba = linear(keys[1], N_ACT, H)         # action Linear(N_ACT -> H)

    rw1, rb1, rw2, rb2 = [], [], [], []
    for i in range(NUM_RES):
        w1, b1 = linear(keys[2 + 2 * i], H, H)
        w2, b2 = linear(keys[3 + 2 * i], H, H)
        rw1.append(w1); rb1.append(b1); rw2.append(w2); rb2.append(b2)

    wsa1, bsa1 = linear(keys[2 + 2 * NUM_RES], 2 * H, H)   # Linear(2H -> H)
    wsa2, bsa2 = linear(keys[3 + 2 * NUM_RES], H, 1)       # Linear(H -> 1)

    return dict(ws=ws, bs=bs, wa=wa, ba=ba,
                rw1=rw1, rb1=rb1, rw2=rw2, rb2=rb2,
                wsa1=wsa1, bsa1=bsa1, wsa2=wsa2, bsa2=bsa2)


def pack_params(p):
    """Pack all weights/biases into 3 kernel inputs (block-diag / zero-padded)."""
    f32 = jnp.float32

    # Entry layer: place Ws and Wa block-diagonally; pad unused rows with zeros.
    w_entry = jnp.zeros((H2, H2), f32)
    w_entry = w_entry.at[:OBS, :H].set(p["ws"])
    w_entry = w_entry.at[OBS:OBS + N_ACT, H:].set(p["wa"])
    b_entry = jnp.concatenate([p["bs"], p["ba"]], axis=-1)          # (1, 2H)

    def blockdiag(w):                                               # (H,H)->(2H,2H)
        z = jnp.zeros((H, H), f32)
        return jnp.block([[w, z], [z, w]])

    w_list = [w_entry]
    b_list = [b_entry]
    for i in range(NUM_RES):
        w_list += [blockdiag(p["rw1"][i]), blockdiag(p["rw2"][i])]
        b_list += [jnp.concatenate([p["rb1"][i], p["rb1"][i]], axis=-1),
                   jnp.concatenate([p["rb2"][i], p["rb2"][i]], axis=-1)]

    # state_action Linear(2H -> H): pad output columns H..2H-1 with zeros.
    w_sa1 = jnp.zeros((H2, H2), f32).at[:, :H].set(p["wsa1"])
    b_sa1 = jnp.zeros((1, H2), f32).at[:, :H].set(p["bsa1"])
    w_list.append(w_sa1)
    b_list.append(b_sa1)

    # bf16 weights: halves the dominant DMA + native MXU operand dtype.
    w_blob = jnp.stack(w_list).astype(jnp.bfloat16)    # (N_LAYERS, 2H, 2H) bf16
    b_blob = jnp.stack(b_list)                         # (N_LAYERS, 1, 2H)  f32

    # Head: row 0 = final weight (zero-padded to 2H), row 1 = [bias, 0, ...].
    head = jnp.zeros((2, H2), f32)
    head = head.at[0, :H].set(p["wsa2"][:, 0])
    head = head.at[1, 0].set(p["bsa2"][0, 0])
    return w_blob, b_blob, head


def pack_inputs(state, action, *, tb=TB):
    """Concatenate state|action, zero-pad lanes to 2H and rows to a TB multiple."""
    b = state.shape[0]
    b_pad = ((b + tb - 1) // tb) * tb
    x = jnp.zeros((b_pad, H2), jnp.float32)
    x = x.at[:b, :OBS].set(state.astype(jnp.float32))
    x = x.at[:b, OBS:OBS + N_ACT].set(action.astype(jnp.float32))
    return x


# ------------------------------- reference ----------------------------------

def critic_reference(state, action, p):
    """Pure-JAX reference replicating the PyTorch Critic.forward semantics."""
    sv = jnp.tanh(state.astype(jnp.float32) @ p["ws"] + p["bs"])
    av = jnp.tanh(action.astype(jnp.float32) @ p["wa"] + p["ba"])

    def res(x):
        for i in range(NUM_RES):
            h = jnp.tanh(x @ p["rw1"][i] + p["rb1"][i])
            h = jnp.tanh(h @ p["rw2"][i] + p["rb2"][i])
            x = x + h
        return x

    xs, xa = res(sv), res(av)
    cat = jnp.concatenate([xs, xa], axis=1)
    h = jnp.tanh(cat @ p["wsa1"] + p["bsa1"])
    return h @ p["wsa2"] + p["bsa2"]


def quantize_weights(p):
    """Round matmul weights to bf16 (matches what the kernel consumes)."""
    q = lambda w: w.astype(jnp.bfloat16).astype(jnp.float32)
    return dict(ws=q(p["ws"]), bs=p["bs"], wa=q(p["wa"]), ba=p["ba"],
                rw1=[q(w) for w in p["rw1"]], rb1=p["rb1"],
                rw2=[q(w) for w in p["rw2"]], rb2=p["rb2"],
                wsa1=q(p["wsa1"]), bsa1=p["bsa1"],
                wsa2=p["wsa2"], bsa2=p["bsa2"])   # head stays f32 in the kernel


if __name__ == "__main__":
    key = jax.random.PRNGKey(0)
    k_state, k_action, k_params = jax.random.split(key, 3)

    B_TOTAL = 256   # two 128-row batch tiles -> exercises the grid + resident weights
    state = jax.random.normal(k_state, (B_TOTAL, OBS), jnp.float32)
    action = jax.random.normal(k_action, (B_TOTAL, N_ACT), jnp.float32)
    params = init_params(k_params)

    w_blob, b_blob, head = pack_params(params)
    x_pad = pack_inputs(state, action)

    out_full = critic_forward(x_pad, w_blob, b_blob, head)
    out_full = jax.block_until_ready(out_full)
    out = out_full[:B_TOTAL]
    assert out.shape == (B_TOTAL, 1)

    # Tight check: kernel vs. a reference using the same bf16-rounded weights
    # (validates packing / layer wiring to ~activation-cast precision).
    ref_q = critic_reference(state, action, quantize_weights(params))
    assert jnp.allclose(out, ref_q, atol=3e-2, rtol=3e-2), (
        float(jnp.max(jnp.abs(out - ref_q))))

    # Loose check: kernel vs. the exact f32 module semantics (bf16 weight cast
    # is the deliberate, reviewed optimization -> loosened tolerance).
    ref = critic_reference(state, action, params)
    assert jnp.allclose(out, ref, atol=1e-1, rtol=1e-1), (
        float(jnp.max(jnp.abs(out - ref))))

    print("KERNEL_OK")
</pallas_src>

<mosaic_0001>
module attributes {stable_mosaic.version = 11 : i64} {
  func.func @critic_kernel(%arg0: i32, %arg1: memref<128x128xf32, #tpu.memory_space<vmem>>, %arg2: memref<10x128x128xbf16, #tpu.memory_space<vmem>>, %arg3: memref<10x1x128xf32, #tpu.memory_space<vmem>>, %arg4: memref<2x128xf32, #tpu.memory_space<vmem>>, %arg5: memref<128x1xf32, #tpu.memory_space<vmem>>) attributes {dimension_semantics = [#tpu.dimension_semantics<parallel>], iteration_bounds = array<i64: 2>, scalar_prefetch = 0 : i64, scratch_operands = 0 : i64, tpu.core_type = #tpu.core_type<tc>, window_params = [{transform_indices = @transform_0, window_bounds = array<i64: 128, 128>}, {pipeline_mode = #tpu.pipeline_mode<synchronous>, transform_indices = @transform_1, window_bounds = array<i64: 10, 128, 128>}, {pipeline_mode = #tpu.pipeline_mode<synchronous>, transform_indices = @transform_2, window_bounds = array<i64: 10, 1, 128>}, {pipeline_mode = #tpu.pipeline_mode<synchronous>, transform_indices = @transform_3, window_bounds = array<i64: 2, 128>}, {transform_indices = @transform_4, window_bounds = array<i64: 128, 1>}]} {
    %c0 = arith.constant 0 : index
    %c0_0 = arith.constant 0 : index
    %0 = vector.load %arg1[%c0, %c0_0] : memref<128x128xf32, #tpu.memory_space<vmem>>, vector<128x128xf32>
    %1 = arith.truncf %0 : vector<128x128xf32> to vector<128x128xbf16>
    %c0_1 = arith.constant 0 : index
    %c0_2 = arith.constant 0 : index
    %c0_3 = arith.constant 0 : index
    %2 = vector.load %arg2[%c0_1, %c0_2, %c0_3] : memref<10x128x128xbf16, #tpu.memory_space<vmem>>, vector<1x128x128xbf16>
    %3 = vector.shape_cast %2 : vector<1x128x128xbf16> to vector<128x128xbf16>
    %cst = arith.constant dense<0.000000e+00> : vector<128x128xf32>
    %4 = tpu.matmul %1, %3, %cst {dimension_numbers = #tpu.dot_dimension_numbers<[1], [0], [0], [1], [0, 0, 1, 1], [], []>} : vector<128x128xbf16>, vector<128x128xbf16>, vector<128x128xf32> -> vector<128x128xf32>
    %c0_4 = arith.constant 0 : index
    %c0_5 = arith.constant 0 : index
    %c0_6 = arith.constant 0 : index
    %5 = vector.load %arg3[%c0_4, %c0_5, %c0_6] : memref<10x1x128xf32, #tpu.memory_space<vmem>>, vector<1x1x128xf32>
    %6 = vector.shape_cast %5 : vector<1x1x128xf32> to vector<1x128xf32>
    %7 = vector.broadcast %6 : vector<1x128xf32> to vector<128x128xf32>
    %8 = arith.addf %4, %7 : vector<128x128xf32>
    %9 = math.tanh %8 : vector<128x128xf32>
    %10 = arith.truncf %9 : vector<128x128xf32> to vector<128x128xbf16>
    %c1 = arith.constant 1 : index
    %c0_7 = arith.constant 0 : index
    %c0_8 = arith.constant 0 : index
    %11 = vector.load %arg2[%c1, %c0_7, %c0_8] : memref<10x128x128xbf16, #tpu.memory_space<vmem>>, vector<1x128x128xbf16>
    %12 = vector.shape_cast %11 : vector<1x128x128xbf16> to vector<128x128xbf16>
    %cst_9 = arith.constant dense<0.000000e+00> : vector<128x128xf32>
    %13 = tpu.matmul %10, %12, %cst_9 {dimension_numbers = #tpu.dot_dimension_numbers<[1], [0], [0], [1], [0, 0, 1, 1], [], []>} : vector<128x128xbf16>, vector<128x128xbf16>, vector<128x128xf32> -> vector<128x128xf32>
    %c1_10 = arith.constant 1 : index
    %c0_11 = arith.constant 0 : index
    %c0_12 = arith.constant 0 : index
    %14 = vector.load %arg3[%c1_10, %c0_11, %c0_12] : memref<10x1x128xf32, #tpu.memory_space<vmem>>, vector<1x1x128xf32>
    %15 = vector.shape_cast %14 : vector<1x1x128xf32> to vector<1x128xf32>
    %16 = vector.broadcast %15 : vector<1x128xf32> to vector<128x128xf32>
    %17 = arith.addf %13, %16 : vector<128x128xf32>
    %18 = math.tanh %17 : vector<128x128xf32>
    %19 = arith.truncf %18 : vector<128x128xf32> to vector<128x128xbf16>
    %c2 = arith.constant 2 : index
    %c0_13 = arith.constant 0 : index
    %c0_14 = arith.constant 0 : index
    %20 = vector.load %arg2[%c2, %c0_13, %c0_14] : memref<10x128x128xbf16, #tpu.memory_space<vmem>>, vector<1x128x128xbf16>
    %21 = vector.shape_cast %20 : vector<1x128x128xbf16> to vector<128x128xbf16>
    %cst_15 = arith.constant dense<0.000000e+00> : vector<128x128xf32>
    %22 = tpu.matmul %19, %21, %cst_15 {dimension_numbers = #tpu.dot_dimension_numbers<[1], [0], [0], [1], [0, 0, 1, 1], [], []>} : vector<128x128xbf16>, vector<128x128xbf16>, vector<128x128xf32> -> vector<128x128xf32>
    %c2_16 = arith.constant 2 : index
    %c0_17 = arith.constant 0 : index
    %c0_18 = arith.constant 0 : index
    %23 = vector.load %arg3[%c2_16, %c0_17, %c0_18] : memref<10x1x128xf32, #tpu.memory_space<vmem>>, vector<1x1x128xf32>
    %24 = vector.shape_cast %23 : vector<1x1x128xf32> to vector<1x128xf32>
    %25 = vector.broadcast %24 : vector<1x128xf32> to vector<128x128xf32>
    %26 = arith.addf %22, %25 : vector<128x128xf32>
    %27 = math.tanh %26 : vector<128x128xf32>
    %28 = arith.addf %9, %27 : vector<128x128xf32>
    %29 = arith.truncf %28 : vector<128x128xf32> to vector<128x128xbf16>
    %c3 = arith.constant 3 : index
    %c0_19 = arith.constant 0 : index
    %c0_20 = arith.constant 0 : index
    %30 = vector.load %arg2[%c3, %c0_19, %c0_20] : memref<10x128x128xbf16, #tpu.memory_space<vmem>>, vector<1x128x128xbf16>
    %31 = vector.shape_cast %30 : vector<1x128x128xbf16> to vector<128x128xbf16>
    %cst_21 = arith.constant dense<0.000000e+00> : vector<128x128xf32>
    %32 = tpu.matmul %29, %31, %cst_21 {dimension_numbers = #tpu.dot_dimension_numbers<[1], [0], [0], [1], [0, 0, 1, 1], [], []>} : vector<128x128xbf16>, vector<128x128xbf16>, vector<128x128xf32> -> vector<128x128xf32>
    %c3_22 = arith.constant 3 : index
    %c0_23 = arith.constant 0 : index
    %c0_24 = arith.constant 0 : index
    %33 = vector.load %arg3[%c3_22, %c0_23, %c0_24] : memref<10x1x128xf32, #tpu.memory_space<vmem>>, vector<1x1x128xf32>
    %34 = vector.shape_cast %33 : vector<1x1x128xf32> to vector<1x128xf32>
    %35 = vector.broadcast %34 : vector<1x128xf32> to vector<128x128xf32>
    %36 = arith.addf %32, %35 : vector<128x128xf32>
    %37 = math.tanh %36 : vector<128x128xf32>
    %38 = arith.truncf %37 : vector<128x128xf32> to vector<128x128xbf16>
    %c4 = arith.constant 4 : index
    %c0_25 = arith.constant 0 : index
    %c0_26 = arith.constant 0 : index
    %39 = vector.load %arg2[%c4, %c0_25, %c0_26] : memref<10x128x128xbf16, #tpu.memory_space<vmem>>, vector<1x128x128xbf16>
    %40 = vector.shape_cast %39 : vector<1x128x128xbf16> to vector<128x128xbf16>
    %cst_27 = arith.constant dense<0.000000e+00> : vector<128x128xf32>
    %41 = tpu.matmul %38, %40, %cst_27 {dimension_numbers = #tpu.dot_dimension_numbers<[1], [0], [0], [1], [0, 0, 1, 1], [], []>} : vector<128x128xbf16>, vector<128x128xbf16>, vector<128x128xf32> -> vector<128x128xf32>
    %c4_28 = arith.constant 4 : index
    %c0_29 = arith.constant 0 : index
    %c0_30 = arith.constant 0 : index
    %42 = vector.load %arg3[%c4_28, %c0_29, %c0_30] : memref<10x1x128xf32, #tpu.memory_space<vmem>>, vector<1x1x128xf32>
    %43 = vector.shape_cast %42 : vector<1x1x128xf32> to vector<1x128xf32>
    %44 = vector.broadcast %43 : vector<1x128xf32> to vector<128x128xf32>
    %45 = arith.addf %41, %44 : vector<128x128xf32>
    %46 = math.tanh %45 : vector<128x128xf32>
    %47 = arith.addf %28, %46 : vector<128x128xf32>
    %48 = arith.truncf %47 : vector<128x128xf32> to vector<128x128xbf16>
    %c5 = arith.constant 5 : index
    %c0_31 = arith.constant 0 : index
    %c0_32 = arith.constant 0 : index
    %49 = vector.load %arg2[%c5, %c0_31, %c0_32] : memref<10x128x128xbf16, #tpu.memory_space<vmem>>, vector<1x128x128xbf16>
    %50 = vector.shape_cast %49 : vector<1x128x128xbf16> to vector<128x128xbf16>
    %cst_33 = arith.constant dense<0.000000e+00> : vector<128x128xf32>
    %51 = tpu.matmul %48, %50, %cst_33 {dimension_numbers = #tpu.dot_dimension_numbers<[1], [0], [0], [1], [0, 0, 1, 1], [], []>} : vector<128x128xbf16>, vector<128x128xbf16>, vector<128x128xf32> -> vector<128x128xf32>
    %c5_34 = arith.constant 5 : index
    %c0_35 = arith.constant 0 : index
    %c0_36 = arith.constant 0 : index
    %52 = vector.load %arg3[%c5_34, %c0_35, %c0_36] : memref<10x1x128xf32, #tpu.memory_space<vmem>>, vector<1x1x128xf32>
    %53 = vector.shape_cast %52 : vector<1x1x128xf32> to vector<1x128xf32>
    %54 = vector.broadcast %53 : vector<1x128xf32> to vector<128x128xf32>
    %55 = arith.addf %51, %54 : vector<128x128xf32>
    %56 = math.tanh %55 : vector<128x128xf32>
    %57 = arith.truncf %56 : vector<128x128xf32> to vector<128x128xbf16>
    %c6 = arith.constant 6 : index
    %c0_37 = arith.constant 0 : index
    %c0_38 = arith.constant 0 : index
    %58 = vector.load %arg2[%c6, %c0_37, %c0_38] : memref<10x128x128xbf16, #tpu.memory_space<vmem>>, vector<1x128x128xbf16>
    %59 = vector.shape_cast %58 : vector<1x128x128xbf16> to vector<128x128xbf16>
    %cst_39 = arith.constant dense<0.000000e+00> : vector<128x128xf32>
    %60 = tpu.matmul %57, %59, %cst_39 {dimension_numbers = #tpu.dot_dimension_numbers<[1], [0], [0], [1], [0, 0, 1, 1], [], []>} : vector<128x128xbf16>, vector<128x128xbf16>, vector<128x128xf32> -> vector<128x128xf32>
    %c6_40 = arith.constant 6 : index
    %c0_41 = arith.constant 0 : index
    %c0_42 = arith.constant 0 : index
    %61 = vector.load %arg3[%c6_40, %c0_41, %c0_42] : memref<10x1x128xf32, #tpu.memory_space<vmem>>, vector<1x1x128xf32>
    %62 = vector.shape_cast %61 : vector<1x1x128xf32> to vector<1x128xf32>
    %63 = vector.broadcast %62 : vector<1x128xf32> to vector<128x128xf32>
    %64 = arith.addf %60, %63 : vector<128x128xf32>
    %65 = math.tanh %64 : vector<128x128xf32>
    %66 = arith.addf %47, %65 : vector<128x128xf32>
    %67 = arith.truncf %66 : vector<128x128xf32> to vector<128x128xbf16>
    %c7 = arith.constant 7 : index
    %c0_43 = arith.constant 0 : index
    %c0_44 = arith.constant 0 : index
    %68 = vector.load %arg2[%c7, %c0_43, %c0_44] : memref<10x128x128xbf16, #tpu.memory_space<vmem>>, vector<1x128x128xbf16>
    %69 = vector.shape_cast %68 : vector<1x128x128xbf16> to vector<128x128xbf16>
    %cst_45 = arith.constant dense<0.000000e+00> : vector<128x128xf32>
    %70 = tpu.matmul %67, %69, %cst_45 {dimension_numbers = #tpu.dot_dimension_numbers<[1], [0], [0], [1], [0, 0, 1, 1], [], []>} : vector<128x128xbf16>, vector<128x128xbf16>, vector<128x128xf32> -> vector<128x128xf32>
    %c7_46 = arith.constant 7 : index
    %c0_47 = arith.constant 0 : index
    %c0_48 = arith.constant 0 : index
    %71 = vector.load %arg3[%c7_46, %c0_47, %c0_48] : memref<10x1x128xf32, #tpu.memory_space<vmem>>, vector<1x1x128xf32>
    %72 = vector.shape_cast %71 : vector<1x1x128xf32> to vector<1x128xf32>
    %73 = vector.broadcast %72 : vector<1x128xf32> to vector<128x128xf32>
    %74 = arith.addf %70, %73 : vector<128x128xf32>
    %75 = math.tanh %74 : vector<128x128xf32>
    %76 = arith.truncf %75 : vector<128x128xf32> to vector<128x128xbf16>
    %c8 = arith.constant 8 : index
    %c0_49 = arith.constant 0 : index
    %c0_50 = arith.constant 0 : index
    %77 = vector.load %arg2[%c8, %c0_49, %c0_50] : memref<10x128x128xbf16, #tpu.memory_space<vmem>>, vector<1x128x128xbf16>
    %78 = vector.shape_cast %77 : vector<1x128x128xbf16> to vector<128x128xbf16>
    %cst_51 = arith.constant dense<0.000000e+00> : vector<128x128xf32>
    %79 = tpu.matmul %76, %78, %cst_51 {dimension_numbers = #tpu.dot_dimension_numbers<[1], [0], [0], [1], [0, 0, 1, 1], [], []>} : vector<128x128xbf16>, vector<128x128xbf16>, vector<128x128xf32> -> vector<128x128xf32>
    %c8_52 = arith.constant 8 : index
    %c0_53 = arith.constant 0 : index
    %c0_54 = arith.constant 0 : index
    %80 = vector.load %arg3[%c8_52, %c0_53, %c0_54] : memref<10x1x128xf32, #tpu.memory_space<vmem>>, vector<1x1x128xf32>
    %81 = vector.shape_cast %80 : vector<1x1x128xf32> to vector<1x128xf32>
    %82 = vector.broadcast %81 : vector<1x128xf32> to vector<128x128xf32>
    %83 = arith.addf %79, %82 : vector<128x128xf32>
    %84 = math.tanh %83 : vector<128x128xf32>
    %85 = arith.addf %66, %84 : vector<128x128xf32>
    %86 = arith.truncf %85 : vector<128x128xf32> to vector<128x128xbf16>
    %c9 = arith.constant 9 : index
    %c0_55 = arith.constant 0 : index
    %c0_56 = arith.constant 0 : index
    %87 = vector.load %arg2[%c9, %c0_55, %c0_56] : memref<10x128x128xbf16, #tpu.memory_space<vmem>>, vector<1x128x128xbf16>
    %88 = vector.shape_cast %87 : vector<1x128x128xbf16> to vector<128x128xbf16>
    %cst_57 = arith.constant dense<0.000000e+00> : vector<128x128xf32>
    %89 = tpu.matmul %86, %88, %cst_57 {dimension_numbers = #tpu.dot_dimension_numbers<[1], [0], [0], [1], [0, 0, 1, 1], [], []>} : vector<128x128xbf16>, vector<128x128xbf16>, vector<128x128xf32> -> vector<128x128xf32>
    %c9_58 = arith.constant 9 : index
    %c0_59 = arith.constant 0 : index
    %c0_60 = arith.constant 0 : index
    %90 = vector.load %arg3[%c9_58, %c0_59, %c0_60] : memref<10x1x128xf32, #tpu.memory_space<vmem>>, vector<1x1x128xf32>
    %91 = vector.shape_cast %90 : vector<1x1x128xf32> to vector<1x128xf32>
    %92 = vector.broadcast %91 : vector<1x128xf32> to vector<128x128xf32>
    %93 = arith.addf %89, %92 : vector<128x128xf32>
    %94 = math.tanh %93 : vector<128x128xf32>
    %c0_61 = arith.constant 0 : index
    %c0_62 = arith.constant 0 : index
    %95 = vector.load %arg4[%c0_61, %c0_62] : memref<2x128xf32, #tpu.memory_space<vmem>>, vector<1x128xf32>
    %96 = vector.broadcast %95 : vector<1x128xf32> to vector<128x128xf32>
    %97 = arith.mulf %94, %96 : vector<128x128xf32>
    %cst_63 = arith.constant dense<0.000000e+00> : vector<128xf32>
    %98 = vector.multi_reduction <add>, %97, %cst_63 [1] : vector<128x128xf32> to vector<128xf32>
    %99 = vector.shape_cast %98 : vector<128xf32> to vector<128x1xf32>
    %c1_64 = arith.constant 1 : index
    %c0_65 = arith.constant 0 : index
    %100 = vector.load %arg4[%c1_64, %c0_65] : memref<2x128xf32, #tpu.memory_space<vmem>>, vector<1x1xf32>
    %101 = vector.broadcast %100 : vector<1x1xf32> to vector<128x1xf32>
    %102 = arith.addf %99, %101 : vector<128x1xf32>
    %c0_66 = arith.constant 0 : index
    %c0_67 = arith.constant 0 : index
    %103 = vector.load %arg5[%c0_66, %c0_67] : memref<128x1xf32, #tpu.memory_space<vmem>>, vector<128x1xf32>
    tpu.vector_store %arg5[%c0_66, %c0_67], %102 {strides = array<i32>} : memref<128x1xf32, #tpu.memory_space<vmem>>, vector<128x1xf32>,
    return
  }
  func.func @transform_0(%arg0: i32) -> (i32, i32) {
    %c0_i32 = arith.constant 0 : i32
    %c0_i32_0 = arith.constant 0 : i32
    return %arg0, %c0_i32 : i32, i32
  }
  func.func @transform_1(%arg0: i32) -> (i32, i32, i32) {
    %c0_i32 = arith.constant 0 : i32
    %c0_i32_0 = arith.constant 0 : i32
    %c0_i32_1 = arith.constant 0 : i32
    %c0_i32_2 = arith.constant 0 : i32
    return %c0_i32, %c0_i32_0, %c0_i32_1 : i32, i32, i32
  }
  func.func @transform_2(%arg0: i32) -> (i32, i32, i32) {
    %c0_i32 = arith.constant 0 : i32
    %c0_i32_0 = arith.constant 0 : i32
    %c0_i32_1 = arith.constant 0 : i32
    %c0_i32_2 = arith.constant 0 : i32
    return %c0_i32, %c0_i32_0, %c0_i32_1 : i32, i32, i32
  }
  func.func @transform_3(%arg0: i32) -> (i32, i32) {
    %c0_i32 = arith.constant 0 : i32
    %c0_i32_0 = arith.constant 0 : i32
    %c0_i32_1 = arith.constant 0 : i32
    return %c0_i32, %c0_i32_0 : i32, i32
  }
  func.func @transform_4(%arg0: i32) -> (i32, i32) {
    %c0_i32 = arith.constant 0 : i32
    %c0_i32_0 = arith.constant 0 : i32
    return %arg0, %c0_i32 : i32, i32
  }
}

</mosaic_0001>

<bundles_post_ra>
// kernel: tpu_custom_call.1
= control target key start
LH: loop header
LB: loop body
LE: loop exit
PB: predicated region body
PF: predicated region fallthrough
CT: control target
= control target key end

     0   :  { %9 = vsyncpa [#allocation3], 0  ;;  %s4261_s0 = inlined_call_operand.hbm [shape: f32[256,128], index: 0, kind: input, shape index: {}]   ;;  %s4262_s1 = inlined_call_operand.hbm [shape: bf16[10,128,128], index: 1, kind: input, shape index: {}]   ;;  %s4263_s2 = inlined_call_operand.hbm [shape: f32[10,1,128], index: 2, kind: input, shape index: {}]   ;;  %s4264_s3 = inlined_call_operand.vmem [shape: f32[2,128], index: 3, kind: input, shape index: {}]   ;;  %s4265_s4 = inlined_call_operand.vmem [shape: f32[256,1], index: 4, kind: output, shape index: {}]  }
   0x1   :  { %11 = vsyncpa [#allocation3 + $0x1], 0 }
   0x2   :  { %12 = vsyncpa [#allocation5], 0  ;;  %s3661_s15 = smov 0   ;;  %s3663_s16 = smov 0  }
   0x3   :  { %s3665_s17 = smov 0   ;;  %s3667_s18 = smov 0  }
   0x4 LB: > { %s2445_s19 = sadd.s32 4294967295, %s3625_s18   ;;  %p38_p0 = scmp.ne.s32.totalorder %s3617_s16, %s3613_s15  ;;  %s3625_s18 = sphi %s3667_s18, %s4281_s18   ;;  %s3621_s17 = sphi %s3665_s17, %s4280_s17   ;;  %s3617_s16 = sphi %s3663_s16, %s4279_s16   ;;  %s3613_s15 = sphi %s3661_s15, %s4278_s15  }
   0x5   : > { %p3683_p1 = scmp.eq.s32.totalorder %s2445_s19, 0  ;;  %p2447_p2 = scmp.ge.s32.totalorder %s3625_s18, 1 }
   0x6   : > { %p138_p3 = scmp.lt.s32.totalorder %s3625_s18, 3  ;;  %s3627_s23 = smov [#allocation4]  }
   0x7   : > { %s4270_s20 = scalar_select %p3683_p1, 1, 0 }
   0x8   : > { %p3691_p4 = por %p3683_p1, %p38_p0  ;;  %p3695_p5 = pnand %p2447_p2, %p138_p3 }
   0x9   : > { %s150_s24 = sshll.u32 %s3627_s23, 4  ;;  %s3628_s26 = smov [#allocation6]   ;;  %s151_s24 = int_to_ptr.vmem [resolvable:$true] %s150_s24 }
   0xa   : > { %s4271_s21 = scalar_select %p3691_p4, 1, 0 }
   0xb   : > { %s4272_s22 = scalar_select %p3695_p5, 1, 0 }
   0xc   : > { %p3045_p6 = pneg %p3695_p5  ;;  %s163_s27 = sshll.u32 %s3628_s26, 4  ;;  %s3707_s27 = int_to_ptr.vmem [resolvable:$true] %s163_s27 }
   0xd   : > { %s3501_s30 = scalar_lea.hbm %s4262_s1, 10240 }
   0xe   : > { %p3703_p7 = pnand %p3045_p6, %p3683_p1  ;;  %p3502_p8 = scmp.ne.s32.totalorder %s4262_s1, %s3501_s30 }
   0xf   : > { %p3508_p12 = scmp.lt.u32.totalorder %s3501_s30, %s4262_s1 }
  0x10   : > { %p3503_p9 = pneg %p3703_p7 }
  0x12   : > { %p3504_p10 = pnand %p3503_p9, %p3502_p8 }
  0x14   : > { %p3505_p11 = pneg %p3504_p10 }
  0x16   : > { %p3510_p13 = pnand %p3508_p12, %p3505_p11 }
  0x18   : > { %3513 = shalt.err (!%p3510_p13)
}
  0x19   : > { %s3514_s9 = scalar_lea.vmem %s151_s24, 10240  ;;  %p3522_p6 = scmp.lt.s32.totalorder %s151_s24, %s151_s24 }
  0x1a   : > { %p3515_p0 = scmp.ne.s32.totalorder %s151_s24, %s3514_s9  ;;  %p3523_p1 = scmp.lt.s32.totalorder %s3514_s9, %s3514_s9 }
  0x1c   : > { %p3517_p2 = pnand %p3515_p0, %p3503_p9  ;;  %p3524_p4 = por %p3523_p1, %p3522_p6 }
  0x1e   : > { %p3518_p3 = pneg %p3517_p2 }
  0x20   : > { %p3525_p5 = pnand %p3524_p4, %p3518_p3 }
  0x22   : > { %3528 = shalt.err (!%p3525_p5)
}
  0x23   : > { %s3629_s10 = smov 64   ;;  %s3630_s11 = smov 4  }
  0x24   : > { %3048 = dma.hbm_to_vmem [thread:$0]  (!%p3703_p7), %s4262_s1, 10240, %s151_s24, [#allocation5], %s3629_s10, %s3629_s10, %s3630_s11  }
  0x25   : > { %s3529_s23 = scalar_lea.hbm %s4263_s2, 160 }
  0x26   : > { %p3530_p8 = scmp.ne.s32.totalorder %s4263_s2, %s3529_s23  ;;  %p3536_p5 = scmp.lt.u32.totalorder %s3529_s23, %s4263_s2 }
  0x28   : > { %p3532_p1 = pnand %p3530_p8, %p3503_p9 }
  0x2a   : > { %p3533_p4 = pneg %p3532_p1 }
  0x2c   : > { %p3538_p10 = pnand %p3536_p5, %p3533_p4 }
  0x2e   : > { %3541 = shalt.err (!%p3538_p10)
}
  0x2f   : > { %s3542_s24 = scalar_lea.vmem %s3707_s27, 160  ;;  %p3550_p0 = scmp.lt.s32.totalorder %s3707_s27, %s3707_s27 }
  0x30   : > { %p3543_p11 = scmp.ne.s32.totalorder %s3707_s27, %s3542_s24  ;;  %p3551_p2 = scmp.lt.s32.totalorder %s3542_s24, %s3542_s24 }
  0x32   : > { %p3545_p12 = pnand %p3543_p11, %p3503_p9  ;;  %p3552_p3 = por %p3551_p2, %p3550_p0 }
  0x34   : > { %p3546_p13 = pneg %p3545_p12 }
  0x36   : > { %p3553_p6 = pnand %p3552_p3, %p3546_p13 }
  0x38   : > { %3556 = shalt.err (!%p3553_p6)
}
  0x39   : > { %s3631_s5 = smov 16   ;;  %s3632_s6 = smov 1  }
  0x3a   : > { %3051 = dma.hbm_to_vmem [thread:$0]  (!%p3703_p7), %s4263_s2, 160, %s3707_s27, [#allocation5], %s3631_s5, %s3631_s5, %s3632_s6  }
  0x3b   : > { %s3757_s9 = sadd.s32 1, %s3625_s18   ;;  %s25_s11 = sadd.s32 1, %s3621_s17 }
  0x3c   : > { %s22_s10 = ssub.s32 %s3625_s18, %s3757_s9  ;;  %p32_p8 = scmp.ne.s32.totalorder %s3621_s17, %s3617_s16 }
  0x3d   : > { %p23_p9 = scmp.eq.s32.totalorder %s22_s10, 0  ;;  %p33_p1 = scmp.eq.s32.totalorder %s3625_s18, 0 }
  0x3e   : > { %p3058_p5 = scmp.lt.s32.totalorder %s3625_s18, 2  ;;  %s180_s13 = sand.u32 1, %s3621_s17  }
  0x3f   : > { %s3766_s12 = scalar_select %p23_p9, %s3621_s17, %s25_s11  }
  0x40   : > { %p34_p4 = por %p33_p1, %p32_p8  ;;  %s2554_s14 = sshll.u32 %s3625_s18, 11 }
  0x41   : > { %s2451_s15 = sshll.u32 %s180_s13, 7  ;;  %s3774_s26 = scalar_lea.hbm %s4261_s0, %s2554_s14 }
  0x42   : > { %s184_s27 = scalar_lea.vmem [#allocation2], %s2451_s15  ;;  %p3776_p7 = pnand %p3058_p5, %p34_p4 }
  0x43   : > { %s191_s28 = sshll.u32 %s184_s27, 4  ;;  %s3782_s30 = scalar_lea.sflag [#allocation3], %s180_s13  ;;  %s3780_s28 = int_to_ptr.vmem [resolvable:$true] %s191_s28 }
  0x44   : > { %s3557_s24 = scalar_lea.hbm %s3774_s26, 2048  ;;  %p3559_p11 = pneg %p3776_p7 }
  0x45   : > { %p3558_p10 = scmp.ne.s32.totalorder %s3774_s26, %s3557_s24  ;;  %s3562_s7 = scalar_lea.hbm %s4261_s0, 4096 }
  0x46   : > { %p3563_p0 = scmp.lt.u32.totalorder %s3774_s26, %s4261_s0  ;;  %p3564_p2 = scmp.lt.u32.totalorder %s3562_s7, %s3557_s24 }
  0x47   : > { %p3560_p12 = pnand %p3559_p11, %p3558_p10  ;;  %p3566_p6 = scmp.lt.u32.totalorder %s3557_s24, %s3774_s26 }
  0x48   : > { %p3565_p3 = por %p3564_p2, %p3563_p0 }
  0x49   : > { %p3561_p13 = pneg %p3560_p12 }
  0x4a   : > { %p3567_p9 = por %p3566_p6, %p3565_p3 }
  0x4c   : > { %p3568_p8 = pnand %p3567_p9, %p3561_p13 }
  0x4e   : > { %3571 = shalt.err (!%p3568_p8)
}
  0x4f   : > { %s3572_s11 = scalar_lea.vmem %s3780_s28, 2048  ;;  %s3633_s13 = smov [#allocation2]  }
  0x50   : > { %p3573_p1 = scmp.ne.s32.totalorder %s3780_s28, %s3572_s11  ;;  %s3577_s14 = sshll.u32 %s3633_s13, 4  ;;  %s3578_s14 = int_to_ptr.vmem [resolvable:$false] %s3577_s14 }
  0x51   : > { %s3579_s15 = scalar_lea.vmem %s3578_s14, 4096  ;;  %p3580_p10 = scmp.lt.s32.totalorder %s3780_s28, %s3578_s14 }
  0x52   : > { %p3575_p4 = pnand %p3573_p1, %p3559_p11  ;;  %p3581_p12 = scmp.lt.s32.totalorder %s3579_s15, %s3572_s11 }
  0x54   : > { %p3576_p5 = pneg %p3575_p4  ;;  %p3582_p0 = por %p3581_p12, %p3580_p10 }
  0x56   : > { %p3583_p2 = pnand %p3582_p0, %p3576_p5 }
  0x58   : > { %3586 = shalt.err (!%p3583_p2)
}
  0x59   : > { %s3634_s25 = smov 128   ;;  %s3635_s23 = smov 8  }
  0x5a   : > { %3055 = dma.hbm_to_vmem [thread:$0]  (!%p3776_p7), %s3774_s26, 2048, %s3780_s28, %s3782_s30, %s3634_s25, %s3634_s25, %s3635_s23  }
  0x5b   : > { %p4275_p11 = scmp.ne.s32.totalorder %s4272_s22, 0 }
  0x5c   : > { %s205_s27 = sand.u32 (!%p4275_p11), 1, %s3617_s16   ;;  %p4276_p13 = scmp.ne.s32.totalorder (!%p4275_p11), %s4271_s21, 0 }
  0x5d   : > { %203 = sbr.rel (%p4275_p11) target bundleno = 2627 (0xa43), region = 36  ;;  %s2455_s24 = sshll.u32 (!%p4275_p11), %s205_s27, 7 }
  0x5e   : > { %s206_s5 = scalar_lea.sflag (!%p4275_p11), [#allocation3], %s205_s27  ;;  %s3813_s6 = scalar_lea.vmem (!%p4275_p11), [#allocation2], %s2455_s24 }
  0x64   : > { %3604 = dma.done.wait (%p4276_p13), %s206_s5, 2048  }
  0x65   : > { %3606 = vsyncadd (%p4276_p13), %s206_s5, 4294965248  ;;  %p4277_p3 = scmp.ne.s32.totalorder %s4270_s20, 0 }
  0x67   : > { %3608 = dma.done.wait (%p4277_p3), [#allocation5], 10400  }
  0x68   : > { %3610 = vsyncadd (%p4277_p3), [#allocation5], 4294956896  ;;  %v3101_v0 = vld [vmem:[#allocation4] sm:$0xff]   ;;  %v3102_v1 = vld [vmem:[#allocation4 + $0x8] sm:$0xff]   ;;  %s2458_s22 = sshll.u32 %s2445_s19, 4  ;;  %vm2342_vm0 = vcmask 7168  }
  0x69   : > { %2715 = vmatprep.subr.bf16.mxu0 %v3101_v0  ;;  %v3103_v2 = vld [vmem:[#allocation4 + $0x10] sm:$0xff]   ;;  %v3104_v3 = vld [vmem:[#allocation4 + $0x18] sm:$0xff]   ;;  %v250_v4 = vld [vmem:[%s3813_s6] sm:$0xff]  ;;  %p244_p7 = scmp.lt.s32.totalorder %s2458_s22, 31 }
  0x6a   : > { %2716 = vmatpush3.bf16.msra.mxu0 %v3101_v0  ;;  %v251_v5 = vld [vmem:[%s3813_s6 + $0x8] sm:$0xff]  ;;  %v3105_v7 = vld [vmem:[#allocation4 + $0x20] sm:$0xff]   ;;  %v3111_v11 = vld [vmem:[#allocation4 + $0x50] sm:$0xff]  }
  0x6b   : > { %2717 = vmatprep.subr.bf16.mxu0 %v3102_v1  ;;  %v266_v6 = vpack.c.bf16 %v251_v5, %v250_v4  ;;  %v3106_v8 = vld [vmem:[#allocation4 + $0x28] sm:$0xff]   ;;  %v3109_v9 = vld [vmem:[#allocation4 + $0x40] sm:$0xff]   ;;  %v3107_v12 = vld [vmem:[#allocation4 + $0x30] sm:$0xff]   ;;  %s4283_s22 = smov (!%p244_p7, %s2458_s22), 31 }
  0x6c   : > { %v3110_v10 = vld [vmem:[#allocation4 + $0x48] sm:$0xff]   ;;  %2747 = vmatprep.subr.bf16.mxu1 %v3109_v9  ;;  %v3108_v13 = vld [vmem:[#allocation4 + $0x38] sm:$0xff]   ;;  %v252_v14 = vld [vmem:[%s3813_s6 + $0x10] sm:$0xff]  ;;  %s2459_s26 = sshll.u32 %s4283_s22, 3 }
  0x6d   : > { %2731 = vmatprep.mubr.bf16.mxu0 %v266_v6  ;;  %2748 = vmatpush3.bf16.msra.mxu1 %v3109_v9  ;;  %v253_v15 = vld [vmem:[%s3813_s6 + $0x18] sm:$0xff]  ;;  %v254_v16 = vld [vmem:[%s3813_s6 + $0x20] sm:$0xff]  ;;  %v255_v17 = vld [vmem:[%s3813_s6 + $0x28] sm:$0xff]  ;;  %s4214_s8 = scalar_lea.vmem %s4265_s4, %s2459_s26 }
  0x6e   : > { %2718 = vmatpush3.bf16.msra.mxu0 %v3102_v1  ;;  %2749 = vmatprep.subr.bf16.mxu1 %v3110_v10  ;;  %v267_v18 = vpack.c.bf16 %v253_v15, %v252_v14  ;;  %v268_v19 = vpack.c.bf16 %v255_v17, %v254_v16  ;;  %v256_v20 = vld [vmem:[%s3813_s6 + $0x30] sm:$0xff]  ;;  %v257_v21 = vld [vmem:[%s3813_s6 + $0x38] sm:$0xff]  ;;  %v258_v22 = vld [vmem:[%s3813_s6 + $0x40] sm:$0xff] }
  0x6f   : > { %2719 = vmatprep.subr.bf16.mxu0 %v3103_v2  ;;  %v259_v23 = vld [vmem:[%s3813_s6 + $0x48] sm:$0xff]  ;;  %v269_v24 = vpack.c.bf16 %v257_v21, %v256_v20  ;;  %v260_v26 = vld [vmem:[%s3813_s6 + $0x50] sm:$0xff]  ;;  %v261_v27 = vld [vmem:[%s3813_s6 + $0x58] sm:$0xff] }
  0x70   : > { %v270_v25 = vpack.c.bf16 %v259_v23, %v258_v22  ;;  %v262_v28 = vld [vmem:[%s3813_s6 + $0x60] sm:$0xff]  ;;  %v263_v29 = vld [vmem:[%s3813_s6 + $0x68] sm:$0xff]  ;;  %v271_v30 = vpack.c.bf16 %v261_v27, %v260_v26  ;;  %v264_v32 = vld [vmem:[%s3813_s6 + $0x70] sm:$0xff] }
  0x71   : > { %2750 = vmatpush3.bf16.msra.mxu1 %v3110_v10  ;;  %v272_v31 = vpack.c.bf16 %v263_v29, %v262_v28  ;;  %v265_v33 = vld [vmem:[%s3813_s6 + $0x78] sm:$0xff]  ;;  %v3113_v36 = vld [vmem:[#allocation4 + $0x60] sm:$0xff]   ;;  %v3114_v37 = vld [vmem:[#allocation4 + $0x68] sm:$0xff]  }
  0x72   : > { %2720 = vmatpush3.bf16.msra.mxu0 %v3103_v2  ;;  %2751 = vmatprep.subr.bf16.mxu1 %v3111_v11  ;;  %v273_v34 = vpack.c.bf16 %v265_v33, %v264_v32  ;;  %v3112_v35 = vld [vmem:[#allocation4 + $0x58] sm:$0xff]   ;;  %v3115_v38 = vld [vmem:[#allocation4 + $0x70] sm:$0xff]   ;;  %v3117_v40 = vld [vmem:[#allocation4 + $0x80] sm:$0xff]  }
  0x73   : > { %2721 = vmatprep.subr.bf16.mxu0 %v3104_v3  ;;  %v3116_v39 = vld [vmem:[#allocation4 + $0x78] sm:$0xff]   ;;  %v3118_v41 = vld [vmem:[#allocation4 + $0x88] sm:$0xff]   ;;  %v3119_v42 = vld [vmem:[#allocation4 + $0x90] sm:$0xff]  }
  0x74   : > { %v3120_v43 = vld [vmem:[#allocation4 + $0x98] sm:$0xff]   ;;  %v2460_v44 = vld [vmem:[#allocation6] ss:$0 sm:$0xff] }
  0x75   : > { %2752 = vmatpush3.bf16.msra.mxu1 %v3111_v11 }
  0x76   : > { %2722 = vmatpush3.bf16.msra.mxu0 %v3104_v3  ;;  %2753 = vmatprep.subr.bf16.mxu1 %v3112_v35 }
  0x77   : > { %2723 = vmatprep.subr.bf16.mxu0 %v3105_v7 }
  0x79   : > { %2754 = vmatpush3.bf16.msra.mxu1 %v3112_v35 }
  0x7a   : > { %2724 = vmatpush3.bf16.msra.mxu0 %v3105_v7  ;;  %2755 = vmatprep.subr.bf16.mxu1 %v3113_v36 }
  0x7b   : > { %2725 = vmatprep.subr.bf16.mxu0 %v3106_v8 }
  0x7d   : > { %2756 = vmatpush3.bf16.msra.mxu1 %v3113_v36 }
  0x7e   : > { %2726 = vmatpush3.bf16.msra.mxu0 %v3106_v8  ;;  %2757 = vmatprep.subr.bf16.mxu1 %v3114_v37 }
  0x7f   : > { %2727 = vmatprep.subr.bf16.mxu0 %v3107_v12 }
  0x81   : > { %2758 = vmatpush3.bf16.msra.mxu1 %v3114_v37  ;;  %v3121_v37 = vld [vmem:[#allocation4 + $0xa0] sm:$0xff]  }
  0x82   : > { %2728 = vmatpush3.bf16.msra.mxu0 %v3107_v12  ;;  %2759 = vmatprep.subr.bf16.mxu1 %v3115_v38 }
  0x83   : > { %2729 = vmatprep.subr.bf16.mxu0 %v3108_v13 }
  0x85   : > { %2760 = vmatpush3.bf16.msra.mxu1 %v3115_v38  ;;  %v3122_v38 = vld [vmem:[#allocation4 + $0xa8] sm:$0xff]  }
  0x86   : > { %2730 = vmatpush3.bf16.msra.mxu0 %v3108_v13  ;;  %2761 = vmatprep.subr.bf16.mxu1 %v3116_v39 }
  0x87   : > { %2779 = vmatprep.subr.bf16.mxu0 %v3117_v40 }
  0x89   : > { %2732 = vmatmul.mubr.bf16.vlgmr.msra.gmra.mrb[0].mxu0 %v267_v18  ;;  %2762 = vmatpush3.bf16.msra.mxu1 %v3116_v39  ;;  %v3123_v39 = vld [vmem:[#allocation4 + $0xb0] sm:$0xff]  }
  0x8a   : > { %2735 = vmatprep.mubr.bf16.mxu0 %v268_v19  ;;  %2780 = vmatpush3.bf16.msra.mxu0 %v3117_v40  ;;  %v3124_v40 = vld [vmem:[#allocation4 + $0xb8] sm:$0xff]  }
  0x8b   : > { %2781 = vmatprep.subr.bf16.mxu0 %v3118_v41 }
  0x8e   : > { %2782 = vmatpush3.bf16.msra.mxu0 %v3118_v41  ;;  %v3125_v41 = vld [vmem:[#allocation4 + $0xc0] sm:$0xff]  }
  0x8f   : > { %2783 = vmatprep.subr.bf16.mxu0 %v3119_v42  ;;  %2811 = vmatprep.subr.bf16.mxu1 %v3125_v41 }
  0x91   : > { %2736 = vmatmul.mubr.bf16.gmra.mrb[4].mxu0 %v269_v24 }
  0x92   : > { %2739 = vmatprep.mubr.bf16.mxu0 %v270_v25  ;;  %2784 = vmatpush3.bf16.msra.mxu0 %v3119_v42  ;;  %v3126_v42 = vld [vmem:[#allocation4 + $0xc8] sm:$0xff]  }
  0x93   : > { %2785 = vmatprep.subr.bf16.mxu0 %v3120_v43 }
  0x96   : > { %2786 = vmatpush3.bf16.msra.mxu0 %v3120_v43  ;;  %v3127_v43 = vld [vmem:[#allocation4 + $0xd0] sm:$0xff]  }
  0x97   : > { %2787 = vmatprep.subr.bf16.mxu0 %v3121_v37 }
  0x99   : > { %2740 = vmatmul.mubr.bf16.gmra.mrb[8].mxu0 %v271_v30 }
  0x9a   : > { %2743 = vmatprep.mubr.bf16.mxu0 %v272_v31  ;;  %2788 = vmatpush3.bf16.msra.mxu0 %v3121_v37 }
  0x9b   : > { %2789 = vmatprep.subr.bf16.mxu0 %v3122_v38 }
  0x9e   : > { %2790 = vmatpush3.bf16.msra.mxu0 %v3122_v38 }
  0x9f   : > { %2791 = vmatprep.subr.bf16.mxu0 %v3123_v39 }
  0xa1   : > { %2744 = vmatmul.mubr.bf16.gmra.mrb[12].mxu0 %v273_v34 }
  0xa2   : > { %2792 = vmatpush3.bf16.msra.mxu0 %v3123_v39 }
  0xa3   : > { %2793 = vmatprep.subr.bf16.mxu0 %v3124_v40 }
  0xa6   : > { %2794 = vmatpush3.bf16.msra.mxu0 %v3124_v40 }
 0x15c   : > { %v2733_v45 = vpop.f32.mrb[0].mxu0 }
 0x15d   : > { %v379_v46 = vpop.f32.mrb[1].mxu0  ;;  %v388_v49 = vadd.f32 %v2733_v45, %v2460_v44 }
 0x15e   : > { %v380_v47 = vadd.f32 %v2460_v44, %v379_v46  ;;  %v2734_v48 = vpop.f32.mrb[2].mxu0 }
 0x15f   : > { %v391_v50 = vadd.f32 %v2734_v48, %v2460_v44  ;;  %v382_v51 = vpop.f32.mrb[3].mxu0 }
 0x160   : > { %3181 = vtanh.f32 %v380_v47  ;;  %v383_v52 = vadd.f32 %v2460_v44, %v382_v51 }
 0x161   : > { %3183 = vtanh.f32 %v391_v50 }
 0x162   : > { %3185 = vtanh.f32 %v383_v52 }
 0x163   : > { %3187 = vtanh.f32 %v388_v49 }
 0x164   : > { %v2737_v53 = vpop.f32.mrb[4].mxu0 }
 0x165   : > { %v395_v54 = vpop.f32.mrb[5].mxu0  ;;  %v404_v57 = vadd.f32 %v2737_v53, %v2460_v44 }
 0x166   : > { %v396_v55 = vadd.f32 %v2460_v44, %v395_v54  ;;  %v2738_v56 = vpop.f32.mrb[6].mxu0 }
 0x167   : > { %v407_v58 = vadd.f32 %v2738_v56, %v2460_v44  ;;  %v398_v59 = vpop.f32.mrb[7].mxu0 }
 0x168   : > { %3189 = vtanh.f32 %v396_v55  ;;  %v399_v60 = vadd.f32 %v2460_v44, %v398_v59 }
 0x169   : > { %3191 = vtanh.f32 %v407_v58 }
 0x16a   : > { %v3839_v61 = vpop.eup %3181  ;;  %3193 = vtanh.f32 %v399_v60 }
 0x16b   : > { %v3841_v62 = vpop.eup %3183  ;;  %3195 = vtanh.f32 %v404_v57 }
 0x16c   : > { %v3843_v63 = vpop.eup %3185  ;;  %v2741_v0 = vpop.f32.mrb[8].mxu0 }
 0x16d   : > { %v3845_v1 = vpop.eup %3187  ;;  %v411_v2 = vpop.f32.mrb[9].mxu0  ;;  %v458_v3 = vpack.c.bf16 %v3843_v63, %v3839_v61  ;;  %v420_v7 = vadd.f32 %v2741_v0, %v2460_v44 }
 0x16e   : > { %v412_v4 = vadd.f32 %v2460_v44, %v411_v2  ;;  %v2742_v5 = vpop.f32.mrb[10].mxu0  ;;  %v459_v6 = vpack.c.bf16 %v3841_v62, %v3845_v1 }
 0x16f   : > { %v423_v8 = vadd.f32 %v2742_v5, %v2460_v44  ;;  %v414_v9 = vpop.f32.mrb[11].mxu0  ;;  %2763 = vmatprep.mubr.bf16.mxu1 %v458_v3 }
 0x170   : > { %3197 = vtanh.f32 %v412_v4  ;;  %v415_v10 = vadd.f32 %v2460_v44, %v414_v9  ;;  %2764 = vmatmul.mubr.bf16.vlgmr.msra.gmra.mrb[0].mxu1 %v459_v6 }
 0x171   : > { %3199 = vtanh.f32 %v423_v8  ;;  %2812 = vmatpush3.bf16.msra.mxu1 %v3125_v41 }
 0x172   : > { %v3851_v11 = vpop.eup %3189  ;;  %3201 = vtanh.f32 %v415_v10  ;;  %2813 = vmatprep.subr.bf16.mxu1 %v3126_v42 }
 0x173   : > { %v3853_v12 = vpop.eup %3191  ;;  %3203 = vtanh.f32 %v420_v7 }
 0x174   : > { %v3855_v13 = vpop.eup %3193  ;;  %v2745_v14 = vpop.f32.mrb[12].mxu0 }
 0x175   : > { %v3857_v15 = vpop.eup %3195  ;;  %v427_v16 = vpop.f32.mrb[13].mxu0  ;;  %v460_v17 = vpack.c.bf16 %v3855_v13, %v3851_v11  ;;  %v436_v21 = vadd.f32 %v2745_v14, %v2460_v44  ;;  %2814 = vmatpush3.bf16.msra.mxu1 %v3126_v42 }
 0x176   : > { %v428_v18 = vadd.f32 %v2460_v44, %v427_v16  ;;  %v2746_v19 = vpop.f32.mrb[14].mxu0  ;;  %v461_v20 = vpack.c.bf16 %v3853_v12, %v3857_v15  ;;  %2815 = vmatprep.subr.bf16.mxu1 %v3127_v43 }
 0x177   : > { %v439_v22 = vadd.f32 %v2746_v19, %v2460_v44  ;;  %v430_v23 = vpop.f32.mrb[15].mxu0  ;;  %2767 = vmatprep.mubr.bf16.mxu1 %v460_v17 }
 0x178   : > { %3205 = vtanh.f32 %v428_v18  ;;  %v431_v24 = vadd.f32 %v2460_v44, %v430_v23  ;;  %2768 = vmatmul.mubr.bf16.gmra.mrb[4].mxu1 %v461_v20  ;;  %v2469_v44 = vld [vmem:[#allocation6 + $0x1] ss:$0 sm:$0xff] }
 0x179   : > { %3207 = vtanh.f32 %v439_v22  ;;  %2816 = vmatpush3.bf16.msra.mxu1 %v3127_v43 }
 0x17a   : > { %v3863_v25 = vpop.eup %3197  ;;  %3209 = vtanh.f32 %v431_v24 }
 0x17b   : > { %v3865_v26 = vpop.eup %3199  ;;  %3211 = vtanh.f32 %v436_v21 }
 0x17c   : > { %v3867_v27 = vpop.eup %3201 }
 0x17d   : > { %v3869_v28 = vpop.eup %3203  ;;  %v462_v29 = vpack.c.bf16 %v3867_v27, %v3863_v25 }
 0x17e   : > { %v463_v30 = vpack.c.bf16 %v3865_v26, %v3869_v28 }
 0x17f   : > { %2771 = vmatprep.mubr.bf16.mxu1 %v462_v29 }
 0x180   : > { %2772 = vmatmul.mubr.bf16.gmra.mrb[8].mxu1 %v463_v30 }
 0x182   : > { %v3875_v31 = vpop.eup %3205 }
 0x183   : > { %v3877_v32 = vpop.eup %3207 }
 0x184   : > { %v3879_v33 = vpop.eup %3209 }
 0x185   : > { %v3881_v34 = vpop.eup %3211  ;;  %v464_v35 = vpack.c.bf16 %v3879_v33, %v3875_v31 }
 0x186   : > { %v465_v36 = vpack.c.bf16 %v3877_v32, %v3881_v34 }
 0x187   : > { %2775 = vmatprep.mubr.bf16.mxu1 %v464_v35 }
 0x188   : > { %2776 = vmatmul.mubr.bf16.gmra.mrb[12].mxu1 %v465_v36 }
 0x243   : > { %v2765_v45 = vpop.f32.mrb[0].mxu1 }
 0x244   : > { %v582_v46 = vadd.f32 %v2765_v45, %v2469_v44  ;;  %v573_v47 = vpop.f32.mrb[1].mxu1 }
 0x245   : > { %v574_v48 = vadd.f32 %v2469_v44, %v573_v47  ;;  %v2766_v49 = vpop.f32.mrb[2].mxu1 }
 0x246   : > { %3213 = vtanh.f32 %v582_v46  ;;  %v585_v50 = vadd.f32 %v2766_v49, %v2469_v44  ;;  %v576_v51 = vpop.f32.mrb[3].mxu1 }
 0x247   : > { %3215 = vtanh.f32 %v574_v48  ;;  %v577_v52 = vadd.f32 %v2469_v44, %v576_v51 }
 0x248   : > { %3217 = vtanh.f32 %v585_v50 }
 0x249   : > { %3219 = vtanh.f32 %v577_v52 }
 0x24b   : > { %v2769_v53 = vpop.f32.mrb[4].mxu1 }
 0x24c   : > { %v598_v54 = vadd.f32 %v2769_v53, %v2469_v44  ;;  %v589_v55 = vpop.f32.mrb[5].mxu1 }
 0x24d   : > { %v590_v56 = vadd.f32 %v2469_v44, %v589_v55  ;;  %v2770_v57 = vpop.f32.mrb[6].mxu1  ;;  %v3130_v55 = vld [vmem:[#allocation4 + $0xe8] sm:$0xff]  }
 0x24e   : > { %3221 = vtanh.f32 %v598_v54  ;;  %v601_v58 = vadd.f32 %v2770_v57, %v2469_v44  ;;  %v592_v59 = vpop.f32.mrb[7].mxu1  ;;  %v3129_v54 = vld [vmem:[#allocation4 + $0xe0] sm:$0xff]   ;;  %v3132_v57 = vld [vmem:[#allocation4 + $0xf8] sm:$0xff]  }
 0x24f   : > { %3223 = vtanh.f32 %v590_v56  ;;  %v593_v60 = vadd.f32 %v2469_v44, %v592_v59  ;;  %v3131_v56 = vld [vmem:[#allocation4 + $0xf0] sm:$0xff]   ;;  %v3134_v59 = vld [vmem:[#allocation4 + $0x108] sm:$0xff]  }
 0x250   : > { %v3214_v0 = vpop.eup %3213  ;;  %3225 = vtanh.f32 %v601_v58  ;;  %v3133_v58 = vld [vmem:[#allocation4 + $0x100] sm:$0xff]  }
 0x251   : > { %v3216_v2 = vpop.eup %3215  ;;  %3227 = vtanh.f32 %v593_v60  ;;  %2843 = vmatprep.subr.bf16.mxu0 %v3133_v58  ;;  %v3135_v60 = vld [vmem:[#allocation4 + $0x110] sm:$0xff]  }
 0x252   : > { %v3218_v3 = vpop.eup %3217 }
 0x253   : > { %v3220_v4 = vpop.eup %3219  ;;  %v2773_v5 = vpop.f32.mrb[8].mxu1  ;;  %v653_v6 = vpack.c.bf16 %v3218_v3, %v3214_v0  ;;  %v3136_v0 = vld [vmem:[#allocation4 + $0x118] sm:$0xff]  }
 0x254   : > { %v614_v7 = vadd.f32 %v2773_v5, %v2469_v44  ;;  %v605_v8 = vpop.f32.mrb[9].mxu1  ;;  %v652_v9 = vpack.c.bf16 %v3220_v4, %v3216_v2  ;;  %v3887_v2 = vld [vmem:[#allocation6 + $0x2] ss:$0 sm:$0xff] }
 0x255   : > { %v606_v10 = vadd.f32 %v2469_v44, %v605_v8  ;;  %v2774_v14 = vpop.f32.mrb[10].mxu1 }
 0x256   : > { %3229 = vtanh.f32 %v614_v7  ;;  %v617_v16 = vadd.f32 %v2774_v14, %v2469_v44  ;;  %v608_v17 = vpop.f32.mrb[11].mxu1  ;;  %2795 = vmatprep.mubr.bf16.mxu0 %v652_v9 }
 0x257   : > { %3231 = vtanh.f32 %v606_v10  ;;  %v609_v18 = vadd.f32 %v2469_v44, %v608_v17  ;;  %2796 = vmatmul.mubr.bf16.vlgmr.msra.gmra.mrb[16].mxu0 %v653_v6 }
 0x258   : > { %v3222_v19 = vpop.eup %3221  ;;  %3233 = vtanh.f32 %v617_v16  ;;  %2844 = vmatpush3.bf16.msra.mxu0 %v3133_v58 }
 0x259   : > { %v3224_v20 = vpop.eup %3223  ;;  %3235 = vtanh.f32 %v609_v18  ;;  %2845 = vmatprep.subr.bf16.mxu0 %v3134_v59 }
 0x25a   : > { %v3226_v21 = vpop.eup %3225 }
 0x25b   : > { %v3228_v22 = vpop.eup %3227  ;;  %v2777_v23 = vpop.f32.mrb[12].mxu1  ;;  %v655_v24 = vpack.c.bf16 %v3226_v21, %v3222_v19 }
 0x25c   : > { %v630_v29 = vadd.f32 %v2777_v23, %v2469_v44  ;;  %v621_v30 = vpop.f32.mrb[13].mxu1  ;;  %v654_v35 = vpack.c.bf16 %v3228_v22, %v3224_v20  ;;  %2846 = vmatpush3.bf16.msra.mxu0 %v3134_v59 }
 0x25d   : > { %v622_v36 = vadd.f32 %v2469_v44, %v621_v30  ;;  %v2778_v37 = vpop.f32.mrb[14].mxu1  ;;  %2847 = vmatprep.subr.bf16.mxu0 %v3135_v60 }
 0x25e   : > { %3237 = vtanh.f32 %v630_v29  ;;  %v633_v38 = vadd.f32 %v2778_v37, %v2469_v44  ;;  %v624_v39 = vpop.f32.mrb[15].mxu1  ;;  %2799 = vmatprep.mubr.bf16.mxu0 %v654_v35 }
 0x25f   : > { %3239 = vtanh.f32 %v622_v36  ;;  %v625_v40 = vadd.f32 %v2469_v44, %v624_v39  ;;  %2800 = vmatmul.mubr.bf16.gmra.mrb[20].mxu0 %v655_v24  ;;  %v3128_v44 = vld [vmem:[#allocation4 + $0xd8] sm:$0xff]  }
 0x260   : > { %v3230_v41 = vpop.eup %3229  ;;  %3241 = vtanh.f32 %v633_v38  ;;  %2817 = vmatprep.subr.bf16.mxu1 %v3128_v44  ;;  %2848 = vmatpush3.bf16.msra.mxu0 %v3135_v60 }
 0x261   : > { %v3232_v42 = vpop.eup %3231  ;;  %3243 = vtanh.f32 %v625_v40  ;;  %2818 = vmatpush3.bf16.msra.mxu1 %v3128_v44  ;;  %2849 = vmatprep.subr.bf16.mxu0 %v3136_v0 }
 0x262   : > { %v3234_v43 = vpop.eup %3233  ;;  %2819 = vmatprep.subr.bf16.mxu1 %v3129_v54 }
 0x263   : > { %v3236_v45 = vpop.eup %3235  ;;  %v657_v46 = vpack.c.bf16 %v3234_v43, %v3230_v41 }
 0x264   : > { %v656_v47 = vpack.c.bf16 %v3236_v45, %v3232_v42  ;;  %2850 = vmatpush3.bf16.msra.mxu0 %v3136_v0 }
 0x265   : > { %2820 = vmatpush3.bf16.msra.mxu1 %v3129_v54 }
 0x266   : > { %2803 = vmatprep.mubr.bf16.mxu0 %v656_v47  ;;  %2821 = vmatprep.subr.bf16.mxu1 %v3130_v55 }
 0x267   : > { %2804 = vmatmul.mubr.bf16.gmra.mrb[24].mxu0 %v657_v46 }
 0x268   : > { %v3238_v48 = vpop.eup %3237 }
 0x269   : > { %v3240_v49 = vpop.eup %3239  ;;  %2822 = vmatpush3.bf16.msra.mxu1 %v3130_v55 }
 0x26a   : > { %v3242_v50 = vpop.eup %3241  ;;  %2823 = vmatprep.subr.bf16.mxu1 %v3131_v56 }
 0x26b   : > { %v3244_v51 = vpop.eup %3243  ;;  %v659_v52 = vpack.c.bf16 %v3242_v50, %v3238_v48 }
 0x26c   : > { %v658_v53 = vpack.c.bf16 %v3244_v51, %v3240_v49 }
 0x26d   : > { %2824 = vmatpush3.bf16.msra.mxu1 %v3131_v56 }
 0x26e   : > { %2807 = vmatprep.mubr.bf16.mxu0 %v658_v53  ;;  %2825 = vmatprep.subr.bf16.mxu1 %v3132_v57 }
 0x26f   : > { %2808 = vmatmul.mubr.bf16.gmra.mrb[28].mxu0 %v659_v52 }
 0x271   : > { %2826 = vmatpush3.bf16.msra.mxu1 %v3132_v57 }
 0x32a   : > { %v2797_v3 = vpop.f32.mrb[16].mxu0 }
 0x32b   : > { %v776_v4 = vadd.f32 %v2797_v3, %v3887_v2  ;;  %v767_v5 = vpop.f32.mrb[17].mxu0 }
 0x32c   : > { %v768_v6 = vadd.f32 %v3887_v2, %v767_v5  ;;  %v2798_v7 = vpop.f32.mrb[18].mxu0 }
 0x32d   : > { %3245 = vtanh.f32 %v776_v4  ;;  %v779_v8 = vadd.f32 %v2798_v7, %v3887_v2  ;;  %v770_v9 = vpop.f32.mrb[19].mxu0 }
 0x32e   : > { %3247 = vtanh.f32 %v768_v6  ;;  %v771_v10 = vadd.f32 %v3887_v2, %v770_v9 }
 0x32f   : > { %3249 = vtanh.f32 %v779_v8 }
 0x330   : > { %3251 = vtanh.f32 %v771_v10 }
 0x332   : > { %v2801_v14 = vpop.f32.mrb[20].mxu0 }
 0x333   : > { %v792_v16 = vadd.f32 %v2801_v14, %v3887_v2  ;;  %v783_v17 = vpop.f32.mrb[21].mxu0 }
 0x334   : > { %v784_v18 = vadd.f32 %v3887_v2, %v783_v17  ;;  %v2802_v19 = vpop.f32.mrb[22].mxu0 }
 0x335   : > { %3253 = vtanh.f32 %v792_v16  ;;  %v795_v20 = vadd.f32 %v2802_v19, %v3887_v2  ;;  %v786_v21 = vpop.f32.mrb[23].mxu0  ;;  %v3137_v19 = vld [vmem:[#allocation4 + $0x120] sm:$0xff]  }
 0x336   : > { %3255 = vtanh.f32 %v784_v18  ;;  %v787_v22 = vadd.f32 %v3887_v2, %v786_v21  ;;  %2851 = vmatprep.subr.bf16.mxu0 %v3137_v19  ;;  %v3143_v21 = vld [vmem:[#allocation4 + $0x150] sm:$0xff]  }
 0x337   : > { %v3246_v23 = vpop.eup %3245  ;;  %3257 = vtanh.f32 %v795_v20  ;;  %2852 = vmatpush3.bf16.msra.mxu0 %v3137_v19  ;;  %v3142_v20 = vld [vmem:[#allocation4 + $0x148] sm:$0xff]  }
 0x338   : > { %v3248_v24 = vpop.eup %3247  ;;  %3259 = vtanh.f32 %v787_v22  ;;  %v3908_v41 = vadd.f32 %v3246_v23, %v3845_v1  ;;  %v2487_v22 = vld [vmem:[#allocation6 + $0x3] ss:$0 sm:$0xff] }
 0x339   : > { %v3250_v29 = vpop.eup %3249  ;;  %v3902_v39 = vadd.f32 %v3248_v24, %v3839_v61 }
 0x33a   : > { %v3252_v30 = vpop.eup %3251  ;;  %v3898_v35 = vadd.f32 %v3250_v29, %v3841_v62  ;;  %v2805_v36 = vpop.f32.mrb[24].mxu0 }
 0x33b   : > { %v808_v37 = vadd.f32 %v2805_v36, %v3887_v2  ;;  %v799_v38 = vpop.f32.mrb[25].mxu0  ;;  %v3905_v40 = vadd.f32 %v3252_v30, %v3843_v63 }
 0x33c   : > { %v800_v42 = vadd.f32 %v3887_v2, %v799_v38  ;;  %v2806_v43 = vpop.f32.mrb[26].mxu0  ;;  %v863_v63 = vpack.c.bf16 %v3898_v35, %v3908_v41 }
 0x33d   : > { %3261 = vtanh.f32 %v808_v37  ;;  %v811_v62 = vadd.f32 %v2806_v43, %v3887_v2  ;;  %v802_v45 = vpop.f32.mrb[27].mxu0  ;;  %v862_v46 = vpack.c.bf16 %v3905_v40, %v3902_v39 }
 0x33e   : > { %3263 = vtanh.f32 %v800_v42  ;;  %v803_v61 = vadd.f32 %v3887_v2, %v802_v45 }
 0x33f   : > { %v3254_v47 = vpop.eup %3253  ;;  %3265 = vtanh.f32 %v811_v62  ;;  %2827 = vmatprep.mubr.bf16.mxu1 %v862_v46 }
 0x340   : > { %v3256_v1 = vpop.eup %3255  ;;  %3267 = vtanh.f32 %v803_v61  ;;  %2828 = vmatmul.mubr.bf16.vlgmr.msra.gmra.mrb[16].mxu1 %v863_v63  ;;  %v3929_v57 = vadd.f32 %v3254_v47, %v3857_v15 }
 0x341   : > { %v3258_v48 = vpop.eup %3257  ;;  %v3922_v44 = vadd.f32 %v3256_v1, %v3851_v11 }
 0x342   : > { %v3260_v49 = vpop.eup %3259  ;;  %v2809_v50 = vpop.f32.mrb[28].mxu0  ;;  %v3918_v51 = vadd.f32 %v3258_v48, %v3853_v12 }
 0x343   : > { %v824_v52 = vadd.f32 %v2809_v50, %v3887_v2  ;;  %v815_v53 = vpop.f32.mrb[29].mxu0  ;;  %v3925_v54 = vadd.f32 %v3260_v49, %v3855_v13 }
 0x344   : > { %v816_v55 = vadd.f32 %v3887_v2, %v815_v53  ;;  %v2810_v56 = vpop.f32.mrb[30].mxu0  ;;  %v865_v13 = vpack.c.bf16 %v3918_v51, %v3929_v57 }
 0x345   : > { %3269 = vtanh.f32 %v824_v52  ;;  %v827_v58 = vadd.f32 %v2810_v56, %v3887_v2  ;;  %v818_v12 = vpop.f32.mrb[31].mxu0  ;;  %v864_v59 = vpack.c.bf16 %v3925_v54, %v3922_v44 }
 0x346   : > { %3271 = vtanh.f32 %v816_v55  ;;  %v819_v11 = vadd.f32 %v3887_v2, %v818_v12 }
 0x347   : > { %v3262_v60 = vpop.eup %3261  ;;  %3273 = vtanh.f32 %v827_v58  ;;  %2831 = vmatprep.mubr.bf16.mxu1 %v864_v59 }
 0x348   : > { %v3264_v0 = vpop.eup %3263  ;;  %3275 = vtanh.f32 %v819_v11  ;;  %2832 = vmatmul.mubr.bf16.gmra.mrb[20].mxu1 %v865_v13  ;;  %v3947_v2 = vadd.f32 %v3262_v60, %v3869_v28 }
 0x349   : > { %v3266_v15 = vpop.eup %3265  ;;  %v3941_v5 = vadd.f32 %v3264_v0, %v3863_v25 }
 0x34a   : > { %v3268_v3 = vpop.eup %3267  ;;  %v3938_v4 = vadd.f32 %v3266_v15, %v3865_v26 }
 0x34b   : > { %v3944_v6 = vadd.f32 %v3268_v3, %v3867_v27 }
 0x34c   : > { %v867_v8 = vpack.c.bf16 %v3938_v4, %v3947_v2 }
 0x34d   : > { %v866_v7 = vpack.c.bf16 %v3944_v6, %v3941_v5 }
 0x34f   : > { %v3270_v9 = vpop.eup %3269  ;;  %2835 = vmatprep.mubr.bf16.mxu1 %v866_v7 }
 0x350   : > { %v3272_v10 = vpop.eup %3271  ;;  %2836 = vmatmul.mubr.bf16.gmra.mrb[24].mxu1 %v867_v8  ;;  %v3963_v16 = vadd.f32 %v3270_v9, %v3881_v34  ;;  %v3141_v34 = vld [vmem:[#allocation4 + $0x140] sm:$0xff]  }
 0x351   : > { %v3274_v26 = vpop.eup %3273  ;;  %v3957_v27 = vadd.f32 %v3272_v10, %v3875_v31  ;;  %v3139_v31 = vld [vmem:[#allocation4 + $0x130] sm:$0xff]   ;;  %2875 = vmatprep.subr.bf16.mxu1 %v3141_v34 }
 0x352   : > { %v3276_v14 = vpop.eup %3275  ;;  %v3954_v25 = vadd.f32 %v3274_v26, %v3877_v32  ;;  %v3138_v32 = vld [vmem:[#allocation4 + $0x128] sm:$0xff]   ;;  %2876 = vmatpush3.bf16.msra.mxu1 %v3141_v34 }
 0x353   : > { %v3960_v28 = vadd.f32 %v3276_v14, %v3879_v33  ;;  %2853 = vmatprep.subr.bf16.mxu0 %v3138_v32  ;;  %v3140_v33 = vld [vmem:[#allocation4 + $0x138] sm:$0xff]   ;;  %2877 = vmatprep.subr.bf16.mxu1 %v3142_v20 }
 0x354   : > { %v869_v18 = vpack.c.bf16 %v3954_v25, %v3963_v16  ;;  %2854 = vmatpush3.bf16.msra.mxu0 %v3138_v32 }
 0x355   : > { %v868_v17 = vpack.c.bf16 %v3960_v28, %v3957_v27  ;;  %2855 = vmatprep.subr.bf16.mxu0 %v3139_v31 }
 0x356   : > { %2878 = vmatpush3.bf16.msra.mxu1 %v3142_v20 }
 0x357   : > { %2839 = vmatprep.mubr.bf16.mxu1 %v868_v17  ;;  %2879 = vmatprep.subr.bf16.mxu1 %v3143_v21 }
 0x358   : > { %2840 = vmatmul.mubr.bf16.gmra.mrb[28].mxu1 %v869_v18  ;;  %2856 = vmatpush3.bf16.msra.mxu0 %v3139_v31 }
 0x359   : > { %2857 = vmatprep.subr.bf16.mxu0 %v3140_v33 }
 0x35a   : > { %2880 = vmatpush3.bf16.msra.mxu1 %v3143_v21 }
 0x35c   : > { %2858 = vmatpush3.bf16.msra.mxu0 %v3140_v33 }
 0x413   : > { %v2829_v23 = vpop.f32.mrb[16].mxu1 }
 0x414   : > { %v986_v24 = vadd.f32 %v2829_v23, %v2487_v22  ;;  %v977_v29 = vpop.f32.mrb[17].mxu1 }
 0x415   : > { %v978_v30 = vadd.f32 %v2487_v22, %v977_v29  ;;  %v2830_v36 = vpop.f32.mrb[18].mxu1 }
 0x416   : > { %3277 = vtanh.f32 %v986_v24  ;;  %v989_v37 = vadd.f32 %v2830_v36, %v2487_v22  ;;  %v980_v38 = vpop.f32.mrb[19].mxu1 }
 0x417   : > { %3279 = vtanh.f32 %v978_v30  ;;  %v981_v42 = vadd.f32 %v2487_v22, %v980_v38 }
 0x418   : > { %3281 = vtanh.f32 %v989_v37 }
 0x419   : > { %3283 = vtanh.f32 %v981_v42 }
 0x41b   : > { %v2833_v43 = vpop.f32.mrb[20].mxu1 }
 0x41c   : > { %v1002_v62 = vadd.f32 %v2833_v43, %v2487_v22  ;;  %v993_v45 = vpop.f32.mrb[21].mxu1 }
 0x41d   : > { %v994_v46 = vadd.f32 %v2487_v22, %v993_v45  ;;  %v2834_v61 = vpop.f32.mrb[22].mxu1  ;;  %v3146_v45 = vld [vmem:[#allocation4 + $0x168] sm:$0xff]  }
 0x41e   : > { %3285 = vtanh.f32 %v1002_v62  ;;  %v1005_v63 = vadd.f32 %v2834_v61, %v2487_v22  ;;  %v996_v47 = vpop.f32.mrb[23].mxu1  ;;  %v3145_v62 = vld [vmem:[#allocation4 + $0x160] sm:$0xff]   ;;  %v3148_v61 = vld [vmem:[#allocation4 + $0x178] sm:$0xff]  }
 0x41f   : > { %3287 = vtanh.f32 %v994_v46  ;;  %v997_v1 = vadd.f32 %v2487_v22, %v996_v47  ;;  %v3147_v46 = vld [vmem:[#allocation4 + $0x170] sm:$0xff]   ;;  %v3150_v47 = vld [vmem:[#allocation4 + $0x188] sm:$0xff]  }
 0x420   : > { %v3278_v48 = vpop.eup %3277  ;;  %3289 = vtanh.f32 %v1005_v63  ;;  %v3149_v63 = vld [vmem:[#allocation4 + $0x180] sm:$0xff]  }
 0x421   : > { %v3280_v49 = vpop.eup %3279  ;;  %3291 = vtanh.f32 %v997_v1  ;;  %2907 = vmatprep.subr.bf16.mxu0 %v3149_v63  ;;  %v3151_v1 = vld [vmem:[#allocation4 + $0x190] sm:$0xff]  }
 0x422   : > { %v3282_v50 = vpop.eup %3281 }
 0x423   : > { %v3284_v52 = vpop.eup %3283  ;;  %v2837_v53 = vpop.f32.mrb[24].mxu1  ;;  %v1057_v55 = vpack.c.bf16 %v3282_v50, %v3278_v48  ;;  %v3152_v48 = vld [vmem:[#allocation4 + $0x198] sm:$0xff]  }
 0x424   : > { %v1018_v56 = vadd.f32 %v2837_v53, %v2487_v22  ;;  %v1009_v58 = vpop.f32.mrb[25].mxu1  ;;  %v1056_v12 = vpack.c.bf16 %v3284_v52, %v3280_v49  ;;  %v3969_v49 = vld [vmem:[#allocation6 + $0x4] ss:$0 sm:$0xff] }
 0x425   : > { %v1010_v59 = vadd.f32 %v2487_v22, %v1009_v58  ;;  %v2838_v11 = vpop.f32.mrb[26].mxu1 }
 0x426   : > { %3293 = vtanh.f32 %v1018_v56  ;;  %v1021_v13 = vadd.f32 %v2838_v11, %v2487_v22  ;;  %v1012_v60 = vpop.f32.mrb[27].mxu1  ;;  %2859 = vmatprep.mubr.bf16.mxu0 %v1056_v12 }
 0x427   : > { %3295 = vtanh.f32 %v1010_v59  ;;  %v1013_v0 = vadd.f32 %v2487_v22, %v1012_v60  ;;  %2860 = vmatmul.mubr.bf16.vlgmr.msra.gmra.mrb[32].mxu0 %v1057_v55 }
 0x428   : > { %v3286_v15 = vpop.eup %3285  ;;  %3297 = vtanh.f32 %v1021_v13  ;;  %2908 = vmatpush3.bf16.msra.mxu0 %v3149_v63 }
 0x429   : > { %v3288_v3 = vpop.eup %3287  ;;  %3299 = vtanh.f32 %v1013_v0  ;;  %2909 = vmatprep.subr.bf16.mxu0 %v3150_v47 }
 0x42a   : > { %v3290_v7 = vpop.eup %3289 }
 0x42b   : > { %v3292_v8 = vpop.eup %3291  ;;  %v2841_v9 = vpop.f32.mrb[28].mxu1  ;;  %v1059_v10 = vpack.c.bf16 %v3290_v7, %v3286_v15 }
 0x42c   : > { %v1034_v26 = vadd.f32 %v2841_v9, %v2487_v22  ;;  %v1025_v14 = vpop.f32.mrb[29].mxu1  ;;  %v1058_v17 = vpack.c.bf16 %v3292_v8, %v3288_v3  ;;  %2910 = vmatpush3.bf16.msra.mxu0 %v3150_v47 }
 0x42d   : > { %v1026_v18 = vadd.f32 %v2487_v22, %v1025_v14  ;;  %v2842_v19 = vpop.f32.mrb[30].mxu1  ;;  %2911 = vmatprep.subr.bf16.mxu0 %v3151_v1 }
 0x42e   : > { %3301 = vtanh.f32 %v1034_v26  ;;  %v1037_v32 = vadd.f32 %v2842_v19, %v2487_v22  ;;  %v1028_v31 = vpop.f32.mrb[31].mxu1  ;;  %2863 = vmatprep.mubr.bf16.mxu0 %v1058_v17 }
 0x42f   : > { %3303 = vtanh.f32 %v1026_v18  ;;  %v1029_v33 = vadd.f32 %v2487_v22, %v1028_v31  ;;  %2864 = vmatmul.mubr.bf16.gmra.mrb[36].mxu0 %v1059_v10  ;;  %v3144_v22 = vld [vmem:[#allocation4 + $0x158] sm:$0xff]  }
 0x430   : > { %v3294_v34 = vpop.eup %3293  ;;  %3305 = vtanh.f32 %v1037_v32  ;;  %2881 = vmatprep.subr.bf16.mxu1 %v3144_v22  ;;  %2912 = vmatpush3.bf16.msra.mxu0 %v3151_v1 }
 0x431   : > { %v3296_v20 = vpop.eup %3295  ;;  %3307 = vtanh.f32 %v1029_v33  ;;  %2882 = vmatpush3.bf16.msra.mxu1 %v3144_v22  ;;  %2913 = vmatprep.subr.bf16.mxu0 %v3152_v48 }
 0x432   : > { %v3298_v21 = vpop.eup %3297  ;;  %2883 = vmatprep.subr.bf16.mxu1 %v3145_v62 }
 0x433   : > { %v3300_v23 = vpop.eup %3299  ;;  %v1061_v24 = vpack.c.bf16 %v3298_v21, %v3294_v34 }
 0x434   : > { %v1060_v29 = vpack.c.bf16 %v3300_v23, %v3296_v20  ;;  %2914 = vmatpush3.bf16.msra.mxu0 %v3152_v48 }
 0x435   : > { %2884 = vmatpush3.bf16.msra.mxu1 %v3145_v62 }
 0x436   : > { %2867 = vmatprep.mubr.bf16.mxu0 %v1060_v29  ;;  %2885 = vmatprep.subr.bf16.mxu1 %v3146_v45 }
 0x437   : > { %2868 = vmatmul.mubr.bf16.gmra.mrb[40].mxu0 %v1061_v24 }
 0x438   : > { %v3302_v30 = vpop.eup %3301 }
 0x439   : > { %v3304_v36 = vpop.eup %3303  ;;  %2886 = vmatpush3.bf16.msra.mxu1 %v3146_v45 }
 0x43a   : > { %v3306_v37 = vpop.eup %3305  ;;  %2887 = vmatprep.subr.bf16.mxu1 %v3147_v46 }
 0x43b   : > { %v3308_v38 = vpop.eup %3307  ;;  %v1063_v42 = vpack.c.bf16 %v3306_v37, %v3302_v30 }
 0x43c   : > { %v1062_v43 = vpack.c.bf16 %v3308_v38, %v3304_v36 }
 0x43d   : > { %2888 = vmatpush3.bf16.msra.mxu1 %v3147_v46 }
 0x43e   : > { %2871 = vmatprep.mubr.bf16.mxu0 %v1062_v43  ;;  %2889 = vmatprep.subr.bf16.mxu1 %v3148_v61 }
 0x43f   : > { %2872 = vmatmul.mubr.bf16.gmra.mrb[44].mxu0 %v1063_v42 }
 0x441   : > { %2890 = vmatpush3.bf16.msra.mxu1 %v3148_v61 }
 0x4fa   : > { %v2861_v50 = vpop.f32.mrb[32].mxu0 }
 0x4fb   : > { %v1180_v52 = vadd.f32 %v2861_v50, %v3969_v49  ;;  %v1171_v53 = vpop.f32.mrb[33].mxu0 }
 0x4fc   : > { %v1172_v55 = vadd.f32 %v3969_v49, %v1171_v53  ;;  %v2862_v56 = vpop.f32.mrb[34].mxu0 }
 0x4fd   : > { %3309 = vtanh.f32 %v1180_v52  ;;  %v1183_v58 = vadd.f32 %v2862_v56, %v3969_v49  ;;  %v1174_v12 = vpop.f32.mrb[35].mxu0 }
 0x4fe   : > { %3311 = vtanh.f32 %v1172_v55  ;;  %v1175_v59 = vadd.f32 %v3969_v49, %v1174_v12 }
 0x4ff   : > { %3313 = vtanh.f32 %v1183_v58 }
 0x500   : > { %3315 = vtanh.f32 %v1175_v59 }
 0x502   : > { %v2865_v11 = vpop.f32.mrb[36].mxu0 }
 0x503   : > { %v1196_v13 = vadd.f32 %v2865_v11, %v3969_v49  ;;  %v1187_v60 = vpop.f32.mrb[37].mxu0 }
 0x504   : > { %v1188_v0 = vadd.f32 %v3969_v49, %v1187_v60  ;;  %v2866_v15 = vpop.f32.mrb[38].mxu0 }
 0x505   : > { %3317 = vtanh.f32 %v1196_v13  ;;  %v1199_v3 = vadd.f32 %v2866_v15, %v3969_v49  ;;  %v1190_v7 = vpop.f32.mrb[39].mxu0  ;;  %v3153_v15 = vld [vmem:[#allocation4 + $0x1a0] sm:$0xff]  }
 0x506   : > { %3319 = vtanh.f32 %v1188_v0  ;;  %v1191_v8 = vadd.f32 %v3969_v49, %v1190_v7  ;;  %2915 = vmatprep.subr.bf16.mxu0 %v3153_v15  ;;  %v3159_v7 = vld [vmem:[#allocation4 + $0x1d0] sm:$0xff]  }
 0x507   : > { %v3310_v9 = vpop.eup %3309  ;;  %3321 = vtanh.f32 %v1199_v3  ;;  %2916 = vmatpush3.bf16.msra.mxu0 %v3153_v15  ;;  %v3158_v3 = vld [vmem:[#allocation4 + $0x1c8] sm:$0xff]  }
 0x508   : > { %v3312_v10 = vpop.eup %3311  ;;  %3323 = vtanh.f32 %v1191_v8  ;;  %v3990_v34 = vadd.f32 %v3310_v9, %v3908_v41  ;;  %v2505_v8 = vld [vmem:[#allocation6 + $0x5] ss:$0 sm:$0xff] }
 0x509   : > { %v3314_v26 = vpop.eup %3313  ;;  %v3984_v31 = vadd.f32 %v3312_v10, %v3902_v39 }
 0x50a   : > { %v3316_v14 = vpop.eup %3315  ;;  %v3980_v17 = vadd.f32 %v3314_v26, %v3898_v35  ;;  %v2869_v18 = vpop.f32.mrb[40].mxu0 }
 0x50b   : > { %v1212_v19 = vadd.f32 %v2869_v18, %v3969_v49  ;;  %v1203_v32 = vpop.f32.mrb[41].mxu0  ;;  %v3987_v33 = vadd.f32 %v3316_v14, %v3905_v40 }
 0x50c   : > { %v1204_v20 = vadd.f32 %v3969_v49, %v1203_v32  ;;  %v2870_v21 = vpop.f32.mrb[42].mxu0  ;;  %v1267_v40 = vpack.c.bf16 %v3980_v17, %v3990_v34 }
 0x50d   : > { %3325 = vtanh.f32 %v1212_v19  ;;  %v1215_v35 = vadd.f32 %v2870_v21, %v3969_v49  ;;  %v1206_v23 = vpop.f32.mrb[43].mxu0  ;;  %v1266_v24 = vpack.c.bf16 %v3987_v33, %v3984_v31 }
 0x50e   : > { %3327 = vtanh.f32 %v1204_v20  ;;  %v1207_v39 = vadd.f32 %v3969_v49, %v1206_v23 }
 0x50f   : > { %v3318_v29 = vpop.eup %3317  ;;  %3329 = vtanh.f32 %v1215_v35  ;;  %2891 = vmatprep.mubr.bf16.mxu1 %v1266_v24 }
 0x510   : > { %v3320_v41 = vpop.eup %3319  ;;  %3331 = vtanh.f32 %v1207_v39  ;;  %2892 = vmatmul.mubr.bf16.vlgmr.msra.gmra.mrb[32].mxu1 %v1267_v40  ;;  %v4011_v61 = vadd.f32 %v3318_v29, %v3929_v57 }
 0x511   : > { %v3322_v30 = vpop.eup %3321  ;;  %v4004_v22 = vadd.f32 %v3320_v41, %v3922_v44 }
 0x512   : > { %v3324_v36 = vpop.eup %3323  ;;  %v2873_v37 = vpop.f32.mrb[44].mxu0  ;;  %v4000_v38 = vadd.f32 %v3322_v30, %v3918_v51 }
 0x513   : > { %v1228_v42 = vadd.f32 %v2873_v37, %v3969_v49  ;;  %v1219_v43 = vpop.f32.mrb[45].mxu0  ;;  %v4007_v62 = vadd.f32 %v3324_v36, %v3925_v54 }
 0x514   : > { %v1220_v45 = vadd.f32 %v3969_v49, %v1219_v43  ;;  %v2874_v46 = vpop.f32.mrb[46].mxu0  ;;  %v1269_v54 = vpack.c.bf16 %v4000_v38, %v4011_v61 }
 0x515   : > { %3333 = vtanh.f32 %v1228_v42  ;;  %v1231_v63 = vadd.f32 %v2874_v46, %v3969_v49  ;;  %v1222_v51 = vpop.f32.mrb[47].mxu0  ;;  %v1268_v47 = vpack.c.bf16 %v4007_v62, %v4004_v22 }
 0x516   : > { %3335 = vtanh.f32 %v1220_v45  ;;  %v1223_v44 = vadd.f32 %v3969_v49, %v1222_v51 }
 0x517   : > { %v3326_v1 = vpop.eup %3325  ;;  %3337 = vtanh.f32 %v1231_v63  ;;  %2895 = vmatprep.mubr.bf16.mxu1 %v1268_v47 }
 0x518   : > { %v3328_v48 = vpop.eup %3327  ;;  %3339 = vtanh.f32 %v1223_v44  ;;  %2896 = vmatmul.mubr.bf16.gmra.mrb[36].mxu1 %v1269_v54  ;;  %v4029_v49 = vadd.f32 %v3326_v1, %v3947_v2 }
 0x519   : > { %v3330_v57 = vpop.eup %3329  ;;  %v4023_v53 = vadd.f32 %v3328_v48, %v3941_v5 }
 0x51a   : > { %v3332_v50 = vpop.eup %3331  ;;  %v4020_v52 = vadd.f32 %v3330_v57, %v3938_v4 }
 0x51b   : > { %v4026_v55 = vadd.f32 %v3332_v50, %v3944_v6 }
 0x51c   : > { %v1271_v58 = vpack.c.bf16 %v4020_v52, %v4029_v49 }
 0x51d   : > { %v1270_v56 = vpack.c.bf16 %v4026_v55, %v4023_v53 }
 0x51f   : > { %v3334_v12 = vpop.eup %3333  ;;  %2899 = vmatprep.mubr.bf16.mxu1 %v1270_v56 }
 0x520   : > { %v3336_v59 = vpop.eup %3335  ;;  %2900 = vmatmul.mubr.bf16.gmra.mrb[40].mxu1 %v1271_v58  ;;  %v4045_v13 = vadd.f32 %v3334_v12, %v3963_v16  ;;  %v3157_v16 = vld [vmem:[#allocation4 + $0x1c0] sm:$0xff]  }
 0x521   : > { %v3338_v4 = vpop.eup %3337  ;;  %v4039_v6 = vadd.f32 %v3336_v59, %v3957_v27  ;;  %v3155_v27 = vld [vmem:[#allocation4 + $0x1b0] sm:$0xff]   ;;  %2939 = vmatprep.subr.bf16.mxu1 %v3157_v16 }
 0x522   : > { %v3340_v11 = vpop.eup %3339  ;;  %v4036_v5 = vadd.f32 %v3338_v4, %v3954_v25  ;;  %v3154_v25 = vld [vmem:[#allocation4 + $0x1a8] sm:$0xff]   ;;  %2940 = vmatpush3.bf16.msra.mxu1 %v3157_v16 }
 0x523   : > { %v4042_v2 = vadd.f32 %v3340_v11, %v3960_v28  ;;  %2917 = vmatprep.subr.bf16.mxu0 %v3154_v25  ;;  %v3156_v28 = vld [vmem:[#allocation4 + $0x1b8] sm:$0xff]   ;;  %2941 = vmatprep.subr.bf16.mxu1 %v3158_v3 }
 0x524   : > { %v1273_v0 = vpack.c.bf16 %v4036_v5, %v4045_v13  ;;  %2918 = vmatpush3.bf16.msra.mxu0 %v3154_v25 }
 0x525   : > { %v1272_v60 = vpack.c.bf16 %v4042_v2, %v4039_v6  ;;  %2919 = vmatprep.subr.bf16.mxu0 %v3155_v27 }
 0x526   : > { %2942 = vmatpush3.bf16.msra.mxu1 %v3158_v3 }
 0x527   : > { %2903 = vmatprep.mubr.bf16.mxu1 %v1272_v60  ;;  %2943 = vmatprep.subr.bf16.mxu1 %v3159_v7 }
 0x528   : > { %2904 = vmatmul.mubr.bf16.gmra.mrb[44].mxu1 %v1273_v0  ;;  %2920 = vmatpush3.bf16.msra.mxu0 %v3155_v27 }
 0x529   : > { %2921 = vmatprep.subr.bf16.mxu0 %v3156_v28 }
 0x52a   : > { %2944 = vmatpush3.bf16.msra.mxu1 %v3159_v7 }
 0x52c   : > { %2922 = vmatpush3.bf16.msra.mxu0 %v3156_v28 }
 0x5e3   : > { %v2893_v9 = vpop.f32.mrb[32].mxu1 }
 0x5e4   : > { %v1390_v10 = vadd.f32 %v2893_v9, %v2505_v8  ;;  %v1381_v26 = vpop.f32.mrb[33].mxu1 }
 0x5e5   : > { %v1382_v14 = vadd.f32 %v2505_v8, %v1381_v26  ;;  %v2894_v18 = vpop.f32.mrb[34].mxu1 }
 0x5e6   : > { %3341 = vtanh.f32 %v1390_v10  ;;  %v1393_v19 = vadd.f32 %v2894_v18, %v2505_v8  ;;  %v1384_v32 = vpop.f32.mrb[35].mxu1 }
 0x5e7   : > { %3343 = vtanh.f32 %v1382_v14  ;;  %v1385_v20 = vadd.f32 %v2505_v8, %v1384_v32 }
 0x5e8   : > { %3345 = vtanh.f32 %v1393_v19 }
 0x5e9   : > { %3347 = vtanh.f32 %v1385_v20 }
 0x5eb   : > { %v2897_v21 = vpop.f32.mrb[36].mxu1 }
 0x5ec   : > { %v1406_v35 = vadd.f32 %v2897_v21, %v2505_v8  ;;  %v1397_v23 = vpop.f32.mrb[37].mxu1 }
 0x5ed   : > { %v1398_v24 = vadd.f32 %v2505_v8, %v1397_v23  ;;  %v2898_v39 = vpop.f32.mrb[38].mxu1  ;;  %v3162_v23 = vld [vmem:[#allocation4 + $0x1e8] sm:$0xff]  }
 0x5ee   : > { %3349 = vtanh.f32 %v1406_v35  ;;  %v1409_v40 = vadd.f32 %v2898_v39, %v2505_v8  ;;  %v1400_v29 = vpop.f32.mrb[39].mxu1  ;;  %v3161_v35 = vld [vmem:[#allocation4 + $0x1e0] sm:$0xff]   ;;  %v3164_v39 = vld [vmem:[#allocation4 + $0x1f8] sm:$0xff]  }
 0x5ef   : > { %3351 = vtanh.f32 %v1398_v24  ;;  %v1401_v41 = vadd.f32 %v2505_v8, %v1400_v29  ;;  %v3163_v24 = vld [vmem:[#allocation4 + $0x1f0] sm:$0xff]   ;;  %v3166_v29 = vld [vmem:[#allocation4 + $0x208] sm:$0xff]  }
 0x5f0   : > { %v3342_v30 = vpop.eup %3341  ;;  %3353 = vtanh.f32 %v1409_v40  ;;  %v3165_v40 = vld [vmem:[#allocation4 + $0x200] sm:$0xff]  }
 0x5f1   : > { %v3344_v36 = vpop.eup %3343  ;;  %3355 = vtanh.f32 %v1401_v41  ;;  %2971 = vmatprep.subr.bf16.mxu0 %v3165_v40  ;;  %v3167_v41 = vld [vmem:[#allocation4 + $0x210] sm:$0xff]  }
 0x5f2   : > { %v3346_v37 = vpop.eup %3345 }
 0x5f3   : > { %v3348_v42 = vpop.eup %3347  ;;  %v2901_v43 = vpop.f32.mrb[40].mxu1  ;;  %v1461_v45 = vpack.c.bf16 %v3346_v37, %v3342_v30  ;;  %v3168_v30 = vld [vmem:[#allocation4 + $0x218] sm:$0xff]  }
 0x5f4   : > { %v1422_v46 = vadd.f32 %v2901_v43, %v2505_v8  ;;  %v1413_v63 = vpop.f32.mrb[41].mxu1  ;;  %v1460_v51 = vpack.c.bf16 %v3348_v42, %v3344_v36  ;;  %v4051_v36 = vld [vmem:[#allocation6 + $0x6] ss:$0 sm:$0xff] }
 0x5f5   : > { %v1414_v47 = vadd.f32 %v2505_v8, %v1413_v63  ;;  %v2902_v44 = vpop.f32.mrb[42].mxu1 }
 0x5f6   : > { %3357 = vtanh.f32 %v1422_v46  ;;  %v1425_v54 = vadd.f32 %v2902_v44, %v2505_v8  ;;  %v1416_v1 = vpop.f32.mrb[43].mxu1  ;;  %2923 = vmatprep.mubr.bf16.mxu0 %v1460_v51 }
 0x5f7   : > { %3359 = vtanh.f32 %v1414_v47  ;;  %v1417_v48 = vadd.f32 %v2505_v8, %v1416_v1  ;;  %2924 = vmatmul.mubr.bf16.vlgmr.msra.gmra.mrb[48].mxu0 %v1461_v45 }
 0x5f8   : > { %v3350_v57 = vpop.eup %3349  ;;  %3361 = vtanh.f32 %v1425_v54  ;;  %2972 = vmatpush3.bf16.msra.mxu0 %v3165_v40 }
 0x5f9   : > { %v3352_v50 = vpop.eup %3351  ;;  %3363 = vtanh.f32 %v1417_v48  ;;  %2973 = vmatprep.subr.bf16.mxu0 %v3166_v29 }
 0x5fa   : > { %v3354_v56 = vpop.eup %3353 }
 0x5fb   : > { %v3356_v58 = vpop.eup %3355  ;;  %v2905_v12 = vpop.f32.mrb[44].mxu1  ;;  %v1463_v59 = vpack.c.bf16 %v3354_v56, %v3350_v57 }
 0x5fc   : > { %v1438_v4 = vadd.f32 %v2905_v12, %v2505_v8  ;;  %v1429_v11 = vpop.f32.mrb[45].mxu1  ;;  %v1462_v60 = vpack.c.bf16 %v3356_v58, %v3352_v50  ;;  %2974 = vmatpush3.bf16.msra.mxu0 %v3166_v29 }
 0x5fd   : > { %v1430_v0 = vadd.f32 %v2505_v8, %v1429_v11  ;;  %v2906_v15 = vpop.f32.mrb[46].mxu1  ;;  %2975 = vmatprep.subr.bf16.mxu0 %v3167_v41 }
 0x5fe   : > { %3365 = vtanh.f32 %v1438_v4  ;;  %v1441_v25 = vadd.f32 %v2906_v15, %v2505_v8  ;;  %v1432_v27 = vpop.f32.mrb[47].mxu1  ;;  %2927 = vmatprep.mubr.bf16.mxu0 %v1462_v60 }
 0x5ff   : > { %3367 = vtanh.f32 %v1430_v0  ;;  %v1433_v28 = vadd.f32 %v2505_v8, %v1432_v27  ;;  %2928 = vmatmul.mubr.bf16.gmra.mrb[52].mxu0 %v1463_v59  ;;  %v3160_v8 = vld [vmem:[#allocation4 + $0x1d8] sm:$0xff]  }
 0x600   : > { %v3358_v16 = vpop.eup %3357  ;;  %3369 = vtanh.f32 %v1441_v25  ;;  %2945 = vmatprep.subr.bf16.mxu1 %v3160_v8  ;;  %2976 = vmatpush3.bf16.msra.mxu0 %v3167_v41 }
 0x601   : > { %v3360_v3 = vpop.eup %3359  ;;  %3371 = vtanh.f32 %v1433_v28  ;;  %2946 = vmatpush3.bf16.msra.mxu1 %v3160_v8  ;;  %2977 = vmatprep.subr.bf16.mxu0 %v3168_v30 }
 0x602   : > { %v3362_v7 = vpop.eup %3361  ;;  %2947 = vmatprep.subr.bf16.mxu1 %v3161_v35 }
 0x603   : > { %v3364_v9 = vpop.eup %3363  ;;  %v1465_v10 = vpack.c.bf16 %v3362_v7, %v3358_v16 }
 0x604   : > { %v1464_v26 = vpack.c.bf16 %v3364_v9, %v3360_v3  ;;  %2978 = vmatpush3.bf16.msra.mxu0 %v3168_v30 }
 0x605   : > { %2948 = vmatpush3.bf16.msra.mxu1 %v3161_v35 }
 0x606   : > { %2931 = vmatprep.mubr.bf16.mxu0 %v1464_v26  ;;  %2949 = vmatprep.subr.bf16.mxu1 %v3162_v23 }
 0x607   : > { %2932 = vmatmul.mubr.bf16.gmra.mrb[56].mxu0 %v1465_v10 }
 0x608   : > { %v3366_v14 = vpop.eup %3365 }
 0x609   : > { %v3368_v18 = vpop.eup %3367  ;;  %2950 = vmatpush3.bf16.msra.mxu1 %v3162_v23 }
 0x60a   : > { %v3370_v19 = vpop.eup %3369  ;;  %2951 = vmatprep.subr.bf16.mxu1 %v3163_v24 }
 0x60b   : > { %v3372_v32 = vpop.eup %3371  ;;  %v1467_v20 = vpack.c.bf16 %v3370_v19, %v3366_v14 }
 0x60c   : > { %v1466_v21 = vpack.c.bf16 %v3372_v32, %v3368_v18 }
 0x60d   : > { %2952 = vmatpush3.bf16.msra.mxu1 %v3163_v24 }
 0x60e   : > { %2935 = vmatprep.mubr.bf16.mxu0 %v1466_v21  ;;  %2953 = vmatprep.subr.bf16.mxu1 %v3164_v39 }
 0x60f   : > { %2936 = vmatmul.mubr.bf16.gmra.mrb[60].mxu0 %v1467_v20 }
 0x611   : > { %2954 = vmatpush3.bf16.msra.mxu1 %v3164_v39 }
 0x6ca   : > { %v2925_v37 = vpop.f32.mrb[48].mxu0 }
 0x6cb   : > { %v1584_v42 = vadd.f32 %v2925_v37, %v4051_v36  ;;  %v1575_v43 = vpop.f32.mrb[49].mxu0 }
 0x6cc   : > { %v1576_v45 = vadd.f32 %v4051_v36, %v1575_v43  ;;  %v2926_v46 = vpop.f32.mrb[50].mxu0 }
 0x6cd   : > { %3373 = vtanh.f32 %v1584_v42  ;;  %v1587_v63 = vadd.f32 %v2926_v46, %v4051_v36  ;;  %v1578_v51 = vpop.f32.mrb[51].mxu0 }
 0x6ce   : > { %3375 = vtanh.f32 %v1576_v45  ;;  %v1579_v47 = vadd.f32 %v4051_v36, %v1578_v51 }
 0x6cf   : > { %3377 = vtanh.f32 %v1587_v63 }
 0x6d0   : > { %3379 = vtanh.f32 %v1579_v47 }
 0x6d2   : > { %v2929_v44 = vpop.f32.mrb[52].mxu0 }
 0x6d3   : > { %v1600_v54 = vadd.f32 %v2929_v44, %v4051_v36  ;;  %v1591_v1 = vpop.f32.mrb[53].mxu0 }
 0x6d4   : > { %v1592_v48 = vadd.f32 %v4051_v36, %v1591_v1  ;;  %v2930_v57 = vpop.f32.mrb[54].mxu0 }
 0x6d5   : > { %3381 = vtanh.f32 %v1600_v54  ;;  %v1603_v50 = vadd.f32 %v2930_v57, %v4051_v36  ;;  %v1594_v56 = vpop.f32.mrb[55].mxu0  ;;  %v3169_v57 = vld [vmem:[#allocation4 + $0x220] sm:$0xff]  }
 0x6d6   : > { %3383 = vtanh.f32 %v1592_v48  ;;  %v1595_v58 = vadd.f32 %v4051_v36, %v1594_v56  ;;  %2979 = vmatprep.subr.bf16.mxu0 %v3169_v57  ;;  %v3175_v56 = vld [vmem:[#allocation4 + $0x250] sm:$0xff]  }
 0x6d7   : > { %v3374_v12 = vpop.eup %3373  ;;  %3385 = vtanh.f32 %v1603_v50  ;;  %2980 = vmatpush3.bf16.msra.mxu0 %v3169_v57  ;;  %v3174_v50 = vld [vmem:[#allocation4 + $0x248] sm:$0xff]  }
 0x6d8   : > { %v3376_v59 = vpop.eup %3375  ;;  %3387 = vtanh.f32 %v1595_v58  ;;  %v4072_v16 = vadd.f32 %v3374_v12, %v3990_v34  ;;  %v2523_v58 = vld [vmem:[#allocation6 + $0x7] ss:$0 sm:$0xff] }
 0x6d9   : > { %v3378_v4 = vpop.eup %3377  ;;  %v4066_v27 = vadd.f32 %v3376_v59, %v3984_v31 }
 0x6da   : > { %v3380_v11 = vpop.eup %3379  ;;  %v4062_v60 = vadd.f32 %v3378_v4, %v3980_v17  ;;  %v2933_v0 = vpop.f32.mrb[56].mxu0 }
 0x6db   : > { %v1616_v15 = vadd.f32 %v2933_v0, %v4051_v36  ;;  %v1607_v25 = vpop.f32.mrb[57].mxu0  ;;  %v4069_v28 = vadd.f32 %v3380_v11, %v3987_v33 }
 0x6dc   : > { %v1608_v3 = vadd.f32 %v4051_v36, %v1607_v25  ;;  %v2934_v7 = vpop.f32.mrb[58].mxu0  ;;  %v1671_v33 = vpack.c.bf16 %v4062_v60, %v4072_v16 }
 0x6dd   : > { %3389 = vtanh.f32 %v1616_v15  ;;  %v1619_v17 = vadd.f32 %v2934_v7, %v4051_v36  ;;  %v1610_v9 = vpop.f32.mrb[59].mxu0  ;;  %v1670_v10 = vpack.c.bf16 %v4069_v28, %v4066_v27 }
 0x6de   : > { %3391 = vtanh.f32 %v1608_v3  ;;  %v1611_v31 = vadd.f32 %v4051_v36, %v1610_v9 }
 0x6df   : > { %v3382_v26 = vpop.eup %3381  ;;  %3393 = vtanh.f32 %v1619_v17  ;;  %2955 = vmatprep.mubr.bf16.mxu1 %v1670_v10 }
 0x6e0   : > { %v3384_v34 = vpop.eup %3383  ;;  %3395 = vtanh.f32 %v1611_v31  ;;  %2956 = vmatmul.mubr.bf16.vlgmr.msra.gmra.mrb[48].mxu1 %v1671_v33  ;;  %v4093_v39 = vadd.f32 %v3382_v26, %v4011_v61 }
 0x6e1   : > { %v3386_v14 = vpop.eup %3385  ;;  %v4086_v8 = vadd.f32 %v3384_v34, %v4004_v22 }
 0x6e2   : > { %v3388_v18 = vpop.eup %3387  ;;  %v2937_v19 = vpop.f32.mrb[60].mxu0  ;;  %v4082_v32 = vadd.f32 %v3386_v14, %v4000_v38 }
 0x6e3   : > { %v1632_v20 = vadd.f32 %v2937_v19, %v4051_v36  ;;  %v1623_v21 = vpop.f32.mrb[61].mxu0  ;;  %v4089_v35 = vadd.f32 %v3388_v18, %v4007_v62 }
 0x6e4   : > { %v1624_v23 = vadd.f32 %v4051_v36, %v1623_v21  ;;  %v2938_v24 = vpop.f32.mrb[62].mxu0  ;;  %v1673_v62 = vpack.c.bf16 %v4082_v32, %v4093_v39 }
 0x6e5   : > { %3397 = vtanh.f32 %v1632_v20  ;;  %v1635_v40 = vadd.f32 %v2938_v24, %v4051_v36  ;;  %v1626_v38 = vpop.f32.mrb[63].mxu0  ;;  %v1672_v29 = vpack.c.bf16 %v4089_v35, %v4086_v8 }
 0x6e6   : > { %3399 = vtanh.f32 %v1624_v23  ;;  %v1627_v22 = vadd.f32 %v4051_v36, %v1626_v38 }
 0x6e7   : > { %v3390_v41 = vpop.eup %3389  ;;  %3401 = vtanh.f32 %v1635_v40  ;;  %2959 = vmatprep.mubr.bf16.mxu1 %v1672_v29 }
 0x6e8   : > { %v3392_v30 = vpop.eup %3391  ;;  %3403 = vtanh.f32 %v1627_v22  ;;  %2960 = vmatmul.mubr.bf16.gmra.mrb[52].mxu1 %v1673_v62  ;;  %v4111_v36 = vadd.f32 %v3390_v41, %v4029_v49 }
 0x6e9   : > { %v3394_v61 = vpop.eup %3393  ;;  %v4105_v43 = vadd.f32 %v3392_v30, %v4023_v53 }
 0x6ea   : > { %v3396_v37 = vpop.eup %3395  ;;  %v4102_v42 = vadd.f32 %v3394_v61, %v4020_v52 }
 0x6eb   : > { %v4108_v45 = vadd.f32 %v3396_v37, %v4026_v55 }
 0x6ec   : > { %v1675_v63 = vpack.c.bf16 %v4102_v42, %v4111_v36 }
 0x6ed   : > { %v1674_v46 = vpack.c.bf16 %v4108_v45, %v4105_v43 }
 0x6ef   : > { %v3398_v51 = vpop.eup %3397  ;;  %2963 = vmatprep.mubr.bf16.mxu1 %v1674_v46 }
 0x6f0   : > { %v3400_v47 = vpop.eup %3399  ;;  %2964 = vmatmul.mubr.bf16.gmra.mrb[56].mxu1 %v1675_v63  ;;  %v4127_v54 = vadd.f32 %v3398_v51, %v4045_v13  ;;  %v3173_v13 = vld [vmem:[#allocation4 + $0x240] sm:$0xff]  }
 0x6f1   : > { %v3402_v52 = vpop.eup %3401  ;;  %v4121_v55 = vadd.f32 %v3400_v47, %v4039_v6  ;;  %v3171_v6 = vld [vmem:[#allocation4 + $0x230] sm:$0xff]   ;;  %3003 = vmatprep.subr.bf16.mxu1 %v3173_v13 }
 0x6f2   : > { %v3404_v44 = vpop.eup %3403  ;;  %v4118_v53 = vadd.f32 %v3402_v52, %v4036_v5  ;;  %v3170_v5 = vld [vmem:[#allocation4 + $0x228] sm:$0xff]   ;;  %3004 = vmatpush3.bf16.msra.mxu1 %v3173_v13 }
 0x6f3   : > { %v4124_v49 = vadd.f32 %v3404_v44, %v4042_v2  ;;  %2981 = vmatprep.subr.bf16.mxu0 %v3170_v5  ;;  %v3172_v2 = vld [vmem:[#allocation4 + $0x238] sm:$0xff]   ;;  %3005 = vmatprep.subr.bf16.mxu1 %v3174_v50 }
 0x6f4   : > { %v1677_v48 = vpack.c.bf16 %v4118_v53, %v4127_v54  ;;  %2982 = vmatpush3.bf16.msra.mxu0 %v3170_v5 }
 0x6f5   : > { %v1676_v1 = vpack.c.bf16 %v4124_v49, %v4121_v55  ;;  %2983 = vmatprep.subr.bf16.mxu0 %v3171_v6 }
 0x6f6   : > { %3006 = vmatpush3.bf16.msra.mxu1 %v3174_v50 }
 0x6f7   : > { %2967 = vmatprep.mubr.bf16.mxu1 %v1676_v1  ;;  %3007 = vmatprep.subr.bf16.mxu1 %v3175_v56 }
 0x6f8   : > { %2968 = vmatmul.mubr.bf16.gmra.mrb[60].mxu1 %v1677_v48  ;;  %2984 = vmatpush3.bf16.msra.mxu0 %v3171_v6 }
 0x6f9   : > { %2985 = vmatprep.subr.bf16.mxu0 %v3172_v2 }
 0x6fa   : > { %3008 = vmatpush3.bf16.msra.mxu1 %v3175_v56 }
 0x6fc   : > { %2986 = vmatpush3.bf16.msra.mxu0 %v3172_v2 }
 0x7b3   : > { %v2957_v12 = vpop.f32.mrb[48].mxu1 }
 0x7b4   : > { %v1794_v59 = vadd.f32 %v2957_v12, %v2523_v58  ;;  %v1785_v4 = vpop.f32.mrb[49].mxu1 }
 0x7b5   : > { %v1786_v11 = vadd.f32 %v2523_v58, %v1785_v4  ;;  %v2958_v0 = vpop.f32.mrb[50].mxu1 }
 0x7b6   : > { %3405 = vtanh.f32 %v1794_v59  ;;  %v1797_v15 = vadd.f32 %v2958_v0, %v2523_v58  ;;  %v1788_v25 = vpop.f32.mrb[51].mxu1 }
 0x7b7   : > { %3407 = vtanh.f32 %v1786_v11  ;;  %v1789_v3 = vadd.f32 %v2523_v58, %v1788_v25 }
 0x7b8   : > { %3409 = vtanh.f32 %v1797_v15 }
 0x7b9   : > { %3411 = vtanh.f32 %v1789_v3 }
 0x7bb   : > { %v2961_v7 = vpop.f32.mrb[52].mxu1 }
 0x7bc   : > { %v1810_v17 = vadd.f32 %v2961_v7, %v2523_v58  ;;  %v1801_v9 = vpop.f32.mrb[53].mxu1 }
 0x7bd   : > { %v1802_v10 = vadd.f32 %v2523_v58, %v1801_v9  ;;  %v2962_v31 = vpop.f32.mrb[54].mxu1  ;;  %v3178_v9 = vld [vmem:[#allocation4 + $0x268] sm:$0xff]  }
 0x7be   : > { %3413 = vtanh.f32 %v1810_v17  ;;  %v1813_v33 = vadd.f32 %v2962_v31, %v2523_v58  ;;  %v1804_v26 = vpop.f32.mrb[55].mxu1  ;;  %v3177_v17 = vld [vmem:[#allocation4 + $0x260] sm:$0xff]   ;;  %v3180_v31 = vld [vmem:[#allocation4 + $0x278] sm:$0xff]  }
 0x7bf   : > { %3415 = vtanh.f32 %v1802_v10  ;;  %v1805_v34 = vadd.f32 %v2523_v58, %v1804_v26  ;;  %v3179_v10 = vld [vmem:[#allocation4 + $0x270] sm:$0xff]  }
 0x7c0   : > { %v3406_v14 = vpop.eup %3405  ;;  %3417 = vtanh.f32 %v1813_v33  ;;  %v4133_v33 = vld [vmem:[#allocation6 + $0x8] ss:$0 sm:$0xff] }
 0x7c1   : > { %v3408_v18 = vpop.eup %3407  ;;  %3419 = vtanh.f32 %v1805_v34 }
 0x7c2   : > { %v3410_v19 = vpop.eup %3409 }
 0x7c3   : > { %v3412_v20 = vpop.eup %3411  ;;  %v2965_v21 = vpop.f32.mrb[56].mxu1  ;;  %v1865_v23 = vpack.c.bf16 %v3410_v19, %v3406_v14 }
 0x7c4   : > { %v1826_v24 = vadd.f32 %v2965_v21, %v2523_v58  ;;  %v1817_v40 = vpop.f32.mrb[57].mxu1  ;;  %v1864_v38 = vpack.c.bf16 %v3412_v20, %v3408_v18 }
 0x7c5   : > { %v1818_v29 = vadd.f32 %v2523_v58, %v1817_v40  ;;  %v2966_v22 = vpop.f32.mrb[58].mxu1 }
 0x7c6   : > { %3421 = vtanh.f32 %v1826_v24  ;;  %v1829_v62 = vadd.f32 %v2966_v22, %v2523_v58  ;;  %v1820_v41 = vpop.f32.mrb[59].mxu1  ;;  %2987 = vmatprep.mubr.bf16.mxu0 %v1864_v38 }
 0x7c7   : > { %3423 = vtanh.f32 %v1818_v29  ;;  %v1821_v30 = vadd.f32 %v2523_v58, %v1820_v41  ;;  %2988 = vmatmul.mubr.bf16.vlgmr.msra.gmra.mrb[64].mxu0 %v1865_v23 }
 0x7c8   : > { %v3414_v61 = vpop.eup %3413  ;;  %3425 = vtanh.f32 %v1829_v62 }
 0x7c9   : > { %v3416_v37 = vpop.eup %3415  ;;  %3427 = vtanh.f32 %v1821_v30 }
 0x7ca   : > { %v3418_v46 = vpop.eup %3417 }
 0x7cb   : > { %v3420_v63 = vpop.eup %3419  ;;  %v2969_v51 = vpop.f32.mrb[60].mxu1  ;;  %v1867_v47 = vpack.c.bf16 %v3418_v46, %v3414_v61 }
 0x7cc   : > { %v1842_v52 = vadd.f32 %v2969_v51, %v2523_v58  ;;  %v1833_v44 = vpop.f32.mrb[61].mxu1  ;;  %v1866_v1 = vpack.c.bf16 %v3420_v63, %v3416_v37 }
 0x7cd   : > { %v1834_v48 = vadd.f32 %v2523_v58, %v1833_v44  ;;  %v2970_v57 = vpop.f32.mrb[62].mxu1 }
 0x7ce   : > { %3429 = vtanh.f32 %v1842_v52  ;;  %v1845_v5 = vadd.f32 %v2970_v57, %v2523_v58  ;;  %v1836_v6 = vpop.f32.mrb[63].mxu1  ;;  %2991 = vmatprep.mubr.bf16.mxu0 %v1866_v1 }
 0x7cf   : > { %3431 = vtanh.f32 %v1834_v48  ;;  %v1837_v2 = vadd.f32 %v2523_v58, %v1836_v6  ;;  %2992 = vmatmul.mubr.bf16.gmra.mrb[68].mxu0 %v1867_v47  ;;  %v3176_v58 = vld [vmem:[#allocation4 + $0x258] sm:$0xff]  }
 0x7d0   : > { %v3422_v13 = vpop.eup %3421  ;;  %3433 = vtanh.f32 %v1845_v5  ;;  %3009 = vmatprep.subr.bf16.mxu1 %v3176_v58 }
 0x7d1   : > { %v3424_v50 = vpop.eup %3423  ;;  %3435 = vtanh.f32 %v1837_v2  ;;  %3010 = vmatpush3.bf16.msra.mxu1 %v3176_v58 }
 0x7d2   : > { %v3426_v56 = vpop.eup %3425  ;;  %3011 = vmatprep.subr.bf16.mxu1 %v3177_v17 }
 0x7d3   : > { %v3428_v12 = vpop.eup %3427  ;;  %v1869_v59 = vpack.c.bf16 %v3426_v56, %v3422_v13 }
 0x7d4   : > { %v1868_v4 = vpack.c.bf16 %v3428_v12, %v3424_v50 }
 0x7d5   : > { %3012 = vmatpush3.bf16.msra.mxu1 %v3177_v17 }
 0x7d6   : > { %2995 = vmatprep.mubr.bf16.mxu0 %v1868_v4  ;;  %3013 = vmatprep.subr.bf16.mxu1 %v3178_v9 }
 0x7d7   : > { %2996 = vmatmul.mubr.bf16.gmra.mrb[72].mxu0 %v1869_v59 }
 0x7d8   : > { %v3430_v11 = vpop.eup %3429 }
 0x7d9   : > { %v3432_v0 = vpop.eup %3431  ;;  %3014 = vmatpush3.bf16.msra.mxu1 %v3178_v9 }
 0x7da   : > { %v3434_v15 = vpop.eup %3433  ;;  %3015 = vmatprep.subr.bf16.mxu1 %v3179_v10 }
 0x7db   : > { %v3436_v25 = vpop.eup %3435  ;;  %v1871_v3 = vpack.c.bf16 %v3434_v15, %v3430_v11 }
 0x7dc   : > { %v1870_v7 = vpack.c.bf16 %v3436_v25, %v3432_v0 }
 0x7dd   : > { %3016 = vmatpush3.bf16.msra.mxu1 %v3179_v10 }
 0x7de   : > { %2999 = vmatprep.mubr.bf16.mxu0 %v1870_v7  ;;  %3017 = vmatprep.subr.bf16.mxu1 %v3180_v31 }
 0x7df   : > { %3000 = vmatmul.mubr.bf16.gmra.mrb[76].mxu0 %v1871_v3 }
 0x7e1   : > { %3018 = vmatpush3.bf16.msra.mxu1 %v3180_v31 }
 0x89a   : > { %v2989_v26 = vpop.f32.mrb[64].mxu0 }
 0x89b   : > { %v1988_v34 = vadd.f32 %v2989_v26, %v4133_v33  ;;  %v1979_v14 = vpop.f32.mrb[65].mxu0 }
 0x89c   : > { %v1980_v18 = vadd.f32 %v4133_v33, %v1979_v14  ;;  %v2990_v19 = vpop.f32.mrb[66].mxu0 }
 0x89d   : > { %3437 = vtanh.f32 %v1988_v34  ;;  %v1991_v20 = vadd.f32 %v2990_v19, %v4133_v33  ;;  %v1982_v21 = vpop.f32.mrb[67].mxu0 }
 0x89e   : > { %3439 = vtanh.f32 %v1980_v18  ;;  %v1983_v23 = vadd.f32 %v4133_v33, %v1982_v21 }
 0x89f   : > { %3441 = vtanh.f32 %v1991_v20 }
 0x8a0   : > { %3443 = vtanh.f32 %v1983_v23 }
 0x8a2   : > { %v2993_v24 = vpop.f32.mrb[68].mxu0 }
 0x8a3   : > { %v2004_v40 = vadd.f32 %v2993_v24, %v4133_v33  ;;  %v1995_v38 = vpop.f32.mrb[69].mxu0 }
 0x8a4   : > { %v1996_v29 = vadd.f32 %v4133_v33, %v1995_v38  ;;  %v2994_v22 = vpop.f32.mrb[70].mxu0 }
 0x8a5   : > { %3445 = vtanh.f32 %v2004_v40  ;;  %v2007_v62 = vadd.f32 %v2994_v22, %v4133_v33  ;;  %v1998_v41 = vpop.f32.mrb[71].mxu0 }
 0x8a6   : > { %3447 = vtanh.f32 %v1996_v29  ;;  %v1999_v30 = vadd.f32 %v4133_v33, %v1998_v41 }
 0x8a7   : > { %v3438_v61 = vpop.eup %3437  ;;  %3449 = vtanh.f32 %v2007_v62 }
 0x8a8   : > { %v3440_v37 = vpop.eup %3439  ;;  %3451 = vtanh.f32 %v1999_v30  ;;  %v2060_v51 = vadd.f32 %v3438_v61, %v4072_v16 }
 0x8a9   : > { %v3442_v46 = vpop.eup %3441  ;;  %v2058_v48 = vadd.f32 %v3440_v37, %v4066_v27 }
 0x8aa   : > { %v3444_v63 = vpop.eup %3443  ;;  %v2061_v47 = vadd.f32 %v3442_v46, %v4062_v60  ;;  %v2997_v52 = vpop.f32.mrb[72].mxu0 }
 0x8ab   : > { %v2020_v44 = vadd.f32 %v2997_v52, %v4133_v33  ;;  %v2011_v1 = vpop.f32.mrb[73].mxu0  ;;  %v2059_v57 = vadd.f32 %v3444_v63, %v4069_v28 }
 0x8ac   : > { %v2012_v5 = vadd.f32 %v4133_v33, %v2011_v1  ;;  %v2998_v6 = vpop.f32.mrb[74].mxu0  ;;  %v2075_v2 = vpack.c.bf16 %v2061_v47, %v2060_v51  ;;  %v4179_v1 = vld [vmem:[%s4264_s3] ss:$0 sm:$0xff] }
 0x8ad   : > { %3453 = vtanh.f32 %v2020_v44  ;;  %v2023_v13 = vadd.f32 %v2998_v6, %v4133_v33  ;;  %v2014_v50 = vpop.f32.mrb[75].mxu0  ;;  %v2074_v56 = vpack.c.bf16 %v2059_v57, %v2058_v48 }
 0x8ae   : > { %3455 = vtanh.f32 %v2012_v5  ;;  %v2015_v60 = vadd.f32 %v4133_v33, %v2014_v50 }
 0x8af   : > { %v3446_v16 = vpop.eup %3445  ;;  %3457 = vtanh.f32 %v2023_v13  ;;  %3019 = vmatprep.mubr.bf16.mxu1 %v2074_v56 }
 0x8b0   : > { %v3448_v12 = vpop.eup %3447  ;;  %3459 = vtanh.f32 %v2015_v60  ;;  %3020 = vmatmul.mubr.bf16.vlgmr.msra.gmra.mrb[64].mxu1 %v2075_v2  ;;  %v2064_v4 = vadd.f32 %v3446_v16, %v4093_v39 }
 0x8b1   : > { %v3450_v27 = vpop.eup %3449  ;;  %v2062_v25 = vadd.f32 %v3448_v12, %v4086_v8 }
 0x8b2   : > { %v3452_v28 = vpop.eup %3451  ;;  %v3001_v59 = vpop.f32.mrb[76].mxu0  ;;  %v2065_v11 = vadd.f32 %v3450_v27, %v4082_v32 }
 0x8b3   : > { %v2036_v0 = vadd.f32 %v3001_v59, %v4133_v33  ;;  %v2027_v15 = vpop.f32.mrb[77].mxu0  ;;  %v2063_v3 = vadd.f32 %v3452_v28, %v4089_v35 }
 0x8b4   : > { %v2028_v7 = vadd.f32 %v4133_v33, %v2027_v15  ;;  %v3002_v58 = vpop.f32.mrb[78].mxu0  ;;  %v2077_v17 = vpack.c.bf16 %v2065_v11, %v2064_v4 }
 0x8b5   : > { %3461 = vtanh.f32 %v2036_v0  ;;  %v2039_v9 = vadd.f32 %v3002_v58, %v4133_v33  ;;  %v2030_v10 = vpop.f32.mrb[79].mxu0  ;;  %v2076_v31 = vpack.c.bf16 %v2063_v3, %v2062_v25 }
 0x8b6   : > { %3463 = vtanh.f32 %v2028_v7  ;;  %v2031_v39 = vadd.f32 %v4133_v33, %v2030_v10 }
 0x8b7   : > { %v3454_v32 = vpop.eup %3453  ;;  %3465 = vtanh.f32 %v2039_v9  ;;  %3023 = vmatprep.mubr.bf16.mxu1 %v2076_v31 }
 0x8b8   : > { %v3456_v26 = vpop.eup %3455  ;;  %3467 = vtanh.f32 %v2031_v39  ;;  %3024 = vmatmul.mubr.bf16.gmra.mrb[68].mxu1 %v2077_v17  ;;  %v2068_v34 = vadd.f32 %v3454_v32, %v4111_v36 }
 0x8b9   : > { %v3458_v8 = vpop.eup %3457  ;;  %v2066_v18 = vadd.f32 %v3456_v26, %v4105_v43 }
 0x8ba   : > { %v3460_v35 = vpop.eup %3459  ;;  %v2069_v14 = vadd.f32 %v3458_v8, %v4102_v42 }
 0x8bb   : > { %v2067_v19 = vadd.f32 %v3460_v35, %v4108_v45  ;;  %v4167_v45 = vld [vmem:[#allocation6 + $0x9] ss:$0 sm:$0xff] }
 0x8bc   : > { %v2079_v20 = vpack.c.bf16 %v2069_v14, %v2068_v34 }
 0x8bd   : > { %v2078_v21 = vpack.c.bf16 %v2067_v19, %v2066_v18 }
 0x8bf   : > { %v3462_v23 = vpop.eup %3461  ;;  %3027 = vmatprep.mubr.bf16.mxu1 %v2078_v21 }
 0x8c0   : > { %v3464_v33 = vpop.eup %3463  ;;  %3028 = vmatmul.mubr.bf16.gmra.mrb[72].mxu1 %v2079_v20  ;;  %v2072_v38 = vadd.f32 %v3462_v23, %v4127_v54 }
 0x8c1   : > { %v3466_v24 = vpop.eup %3465  ;;  %v2070_v36 = vadd.f32 %v3464_v33, %v4121_v55 }
 0x8c2   : > { %v3468_v40 = vpop.eup %3467  ;;  %v2073_v29 = vadd.f32 %v3466_v24, %v4118_v53 }
 0x8c3   : > { %v2071_v42 = vadd.f32 %v3468_v40, %v4124_v49 }
 0x8c4   : > { %v2081_v22 = vpack.c.bf16 %v2073_v29, %v2072_v38 }
 0x8c5   : > { %v2080_v43 = vpack.c.bf16 %v2071_v42, %v2070_v36 }
 0x8c7   : > { %3031 = vmatprep.mubr.bf16.mxu1 %v2080_v43 }
 0x8c8   : > { %3032 = vmatmul.mubr.bf16.gmra.mrb[76].mxu1 %v2081_v22 }
 0x983   : > { %v3021_v62 = vpop.f32.mrb[64].mxu1 }
 0x984   : > { %v2198_v41 = vadd.f32 %v3021_v62, %v4167_v45  ;;  %v2189_v30 = vpop.f32.mrb[65].mxu1 }
 0x985   : > { %v2190_v61 = vadd.f32 %v4167_v45, %v2189_v30  ;;  %v3022_v37 = vpop.f32.mrb[66].mxu1 }
 0x986   : > { %3469 = vtanh.f32 %v2198_v41  ;;  %v2201_v53 = vadd.f32 %v3022_v37, %v4167_v45  ;;  %v2192_v54 = vpop.f32.mrb[67].mxu1  ;;  %v2551_v41 = vld [vmem:[%s4264_s3 + $0x1] ss:$0 sm:$0xff] }
 0x987   : > { %3471 = vtanh.f32 %v2190_v61  ;;  %v2193_v55 = vadd.f32 %v4167_v45, %v2192_v54 }
 0x988   : > { %3473 = vtanh.f32 %v2201_v53 }
 0x989   : > { %3475 = vtanh.f32 %v2193_v55 }
 0x98b   : > { %v3025_v49 = vpop.f32.mrb[68].mxu1 }
 0x98c   : > { %v2214_v46 = vadd.f32 %v3025_v49, %v4167_v45  ;;  %v2205_v63 = vpop.f32.mrb[69].mxu1 }
 0x98d   : > { %v2206_v51 = vadd.f32 %v4167_v45, %v2205_v63  ;;  %v3026_v47 = vpop.f32.mrb[70].mxu1 }
 0x98e   : > { %3477 = vtanh.f32 %v2214_v46  ;;  %v2217_v52 = vadd.f32 %v3026_v47, %v4167_v45  ;;  %v2208_v44 = vpop.f32.mrb[71].mxu1 }
 0x98f   : > { %v2209_v48 = vadd.f32 %v4167_v45, %v2208_v44 }
 0x990   : > { %v3470_v57 = vpop.eup %3469  ;;  %3479 = vtanh.f32 %v2217_v52 }
 0x991   : > { %v3472_v5 = vpop.eup %3471  ;;  %3481 = vtanh.f32 %v2206_v51  ;;  %v2275_v6 = vmul.f32 %v3470_v57, %v4179_v1 }
 0x992   : > { %v3474_v2 = vpop.eup %3473  ;;  %3483 = vtanh.f32 %v2209_v48  ;;  %v2273_v13 = vmul.f32 %v3472_v5, %v4179_v1 }
 0x993   : > { %v3476_v50 = vpop.eup %3475  ;;  %2293 = vadd.xlane.f32.xlu1 %v2275_v6  ;;  %v3029_v56 = vpop.f32.mrb[72].mxu1  ;;  %v2276_v28 = vmul.f32 %v3474_v2, %v4179_v1 }
 0x994   : > { %v2230_v60 = vadd.f32 %v3029_v56, %v4167_v45  ;;  %v2221_v16 = vpop.f32.mrb[73].mxu1  ;;  %2289 = vadd.xlane.f32.xlu0 %v2273_v13  ;;  %v2274_v11 = vmul.f32 %v3476_v50, %v4179_v1 }
 0x995   : > { %v2222_v12 = vadd.f32 %v4167_v45, %v2221_v16  ;;  %v3030_v27 = vpop.f32.mrb[74].mxu1 }
 0x996   : > { %3485 = vtanh.f32 %v2230_v60  ;;  %v2233_v59 = vadd.f32 %v3030_v27, %v4167_v45  ;;  %v2224_v4 = vpop.f32.mrb[75].mxu1 }
 0x997   : > { %v2225_v0 = vadd.f32 %v4167_v45, %v2224_v4  ;;  %2295 = vadd.xlane.f32.xlu1 %v2276_v28 }
 0x998   : > { %v3478_v15 = vpop.eup %3477  ;;  %3487 = vtanh.f32 %v2233_v59  ;;  %2291 = vadd.xlane.f32.xlu0 %v2274_v11 }
 0x999   : > { %3489 = vtanh.f32 %v2222_v12  ;;  %v2279_v25 = vmul.f32 %v3478_v15, %v4179_v1 }
 0x99a   : > { %v3480_v3 = vpop.eup %3479  ;;  %3491 = vtanh.f32 %v2225_v0 }
 0x99b   : > { %v3482_v7 = vpop.eup %3481  ;;  %v3033_v58 = vpop.f32.mrb[76].mxu1  ;;  %v2280_v17 = vmul.f32 %v3480_v3, %v4179_v1 }
 0x99c   : > { %v3484_v9 = vpop.eup %3483  ;;  %v2246_v10 = vadd.f32 %v3033_v58, %v4167_v45  ;;  %v2237_v31 = vpop.f32.mrb[77].mxu1  ;;  %2301 = vadd.xlane.f32.xlu0 %v2279_v25  ;;  %v2277_v8 = vmul.f32 %v3482_v7, %v4179_v1 }
 0x99d   : > { %v2238_v39 = vadd.f32 %v4167_v45, %v2237_v31  ;;  %2303 = vadd.xlane.f32.xlu1 %v2280_v17  ;;  %v3034_v32 = vpop.f32.mrb[78].mxu1  ;;  %v2278_v14 = vmul.f32 %v3484_v9, %v4179_v1 }
 0x99e   : > { %v2240_v26 = vpop.f32.mrb[79].mxu1  ;;  %v2249_v35 = vadd.f32 %v3034_v32, %v4167_v45 }
 0x99f   : > { %3493 = vtanh.f32 %v2238_v39  ;;  %v2241_v34 = vadd.f32 %v4167_v45, %v2240_v26 }
 0x9a0   : > { %v3486_v18 = vpop.eup %3485  ;;  %3495 = vtanh.f32 %v2246_v10  ;;  %2297 = vadd.xlane.f32.xlu0 %v2277_v8 }
 0x9a1   : > { %3497 = vtanh.f32 %v2241_v34  ;;  %2299 = vadd.xlane.f32.xlu1 %v2278_v14  ;;  %v2283_v19 = vmul.f32 %v3486_v18, %v4179_v1 }
 0x9a2   : > { %v3488_v20 = vpop.eup %3487  ;;  %3499 = vtanh.f32 %v2249_v35 }
 0x9a3   : > { %v3490_v21 = vpop.eup %3489  ;;  %v2284_v23 = vmul.f32 %v3488_v20, %v4179_v1 }
 0x9a4   : > { %v3492_v33 = vpop.eup %3491  ;;  %2309 = vadd.xlane.f32.xlu0 %v2283_v19  ;;  %v2281_v24 = vmul.f32 %v3490_v21, %v4179_v1 }
 0x9a5   : > { %2311 = vadd.xlane.f32.xlu1 %v2284_v23  ;;  %v2282_v40 = vmul.f32 %v3492_v33, %v4179_v1 }
 0x9a8   : > { %2305 = vadd.xlane.f32.xlu0 %v2281_v24 }
 0x9a9   : > { %v3494_v38 = vpop.eup %3493  ;;  %2307 = vadd.xlane.f32.xlu1 %v2282_v40 }
 0x9aa   : > { %v3496_v29 = vpop.eup %3495  ;;  %v2285_v36 = vmul.f32 %v3494_v38, %v4179_v1 }
 0x9ab   : > { %v3498_v42 = vpop.eup %3497  ;;  %v2287_v45 = vmul.f32 %v3496_v29, %v4179_v1 }
 0x9ac   : > { %2313 = vadd.xlane.f32.xlu0 %v2285_v36  ;;  %v2286_v22 = vmul.f32 %v3498_v42, %v4179_v1  ;;  %v3500_v43 = vpop.eup %3499 }
 0x9ad   : > { %v2288_v62 = vmul.f32 %v3500_v43, %v4179_v1 }
 0x9ae   : > { %2315 = vadd.xlane.f32.xlu1 %v2286_v22 }
 0x9b0   : > { %2317 = vadd.xlane.f32.xlu0 %v2287_v45 }
 0x9b2   : > { %2319 = vadd.xlane.f32.xlu1 %v2288_v62 }
 0xa20   : > { %v2294_v30 = vpop.xlane.xlu1 %2293 }
 0xa21   : > { %v2328_v61 = vadd.f32 %v2551_v41, %v2294_v30  ;;  %v2290_v37 = vpop.xlane.xlu0 %2289 }
 0xa22   : > { %v2326_v53 = vadd.f32 %v2551_v41, %v2290_v37 }
 0xa23   : > { %2345 = vst.msk [vmem:[%s4214_s8 + $0x10] sm:$0xff] %vm2342_vm0, %v2328_v61 }
 0xa24   : > { %2343 = vst.msk [vmem:[%s4214_s8] sm:$0xff] %vm2342_vm0, %v2326_v53  ;;  %v2296_v54 = vpop.xlane.xlu1 %2295 }
 0xa25   : > { %v2329_v55 = vadd.f32 %v2551_v41, %v2296_v54  ;;  %v2292_v49 = vpop.xlane.xlu0 %2291 }
 0xa26   : > { %v2327_v46 = vadd.f32 %v2551_v41, %v2292_v49 }
 0xa27   : > { %2346 = vst.msk [vmem:[%s4214_s8 + $0x18] sm:$0xff] %vm2342_vm0, %v2329_v55 }
 0xa28   : > { %2344 = vst.msk [vmem:[%s4214_s8 + $0x8] sm:$0xff] %vm2342_vm0, %v2327_v46 }
 0xa29   : > { %v2302_v63 = vpop.xlane.xlu0 %2301 }
 0xa2a   : > { %v2332_v51 = vadd.f32 %v2551_v41, %v2302_v63  ;;  %v2304_v47 = vpop.xlane.xlu1 %2303 }
 0xa2b   : > { %v2333_v52 = vadd.f32 %v2551_v41, %v2304_v47 }
 0xa2c   : > { %2349 = vst.msk [vmem:[%s4214_s8 + $0x30] sm:$0xff] %vm2342_vm0, %v2332_v51 }
 0xa2d   : > { %2350 = vst.msk [vmem:[%s4214_s8 + $0x38] sm:$0xff] %vm2342_vm0, %v2333_v52  ;;  %v2298_v44 = vpop.xlane.xlu0 %2297 }
 0xa2e   : > { %v2330_v1 = vadd.f32 %v2551_v41, %v2298_v44  ;;  %v2300_v48 = vpop.xlane.xlu1 %2299 }
 0xa2f   : > { %v2331_v57 = vadd.f32 %v2551_v41, %v2300_v48 }
 0xa30   : > { %2347 = vst.msk [vmem:[%s4214_s8 + $0x20] sm:$0xff] %vm2342_vm0, %v2330_v1 }
 0xa31   : > { %2348 = vst.msk [vmem:[%s4214_s8 + $0x28] sm:$0xff] %vm2342_vm0, %v2331_v57  ;;  %v2310_v5 = vpop.xlane.xlu0 %2309 }
 0xa32   : > { %v2336_v6 = vadd.f32 %v2551_v41, %v2310_v5  ;;  %v2312_v2 = vpop.xlane.xlu1 %2311 }
 0xa33   : > { %v2337_v13 = vadd.f32 %v2551_v41, %v2312_v2 }
 0xa34   : > { %2353 = vst.msk [vmem:[%s4214_s8 + $0x50] sm:$0xff] %vm2342_vm0, %v2336_v6 }
 0xa35   : > { %2354 = vst.msk [vmem:[%s4214_s8 + $0x58] sm:$0xff] %vm2342_vm0, %v2337_v13  ;;  %v2306_v50 = vpop.xlane.xlu0 %2305 }
 0xa36   : > { %v2334_v56 = vadd.f32 %v2551_v41, %v2306_v50  ;;  %v2308_v60 = vpop.xlane.xlu1 %2307 }
 0xa37   : > { %v2335_v16 = vadd.f32 %v2551_v41, %v2308_v60 }
 0xa38   : > { %2351 = vst.msk [vmem:[%s4214_s8 + $0x40] sm:$0xff] %vm2342_vm0, %v2334_v56 }
 0xa39   : > { %2352 = vst.msk [vmem:[%s4214_s8 + $0x48] sm:$0xff] %vm2342_vm0, %v2335_v16  ;;  %v2314_v12 = vpop.xlane.xlu0 %2313 }
 0xa3a   : > { %v2338_v27 = vadd.f32 %v2551_v41, %v2314_v12 }
 0xa3b   : > { %v2316_v28 = vpop.xlane.xlu1 %2315 }
 0xa3c   : > { %2355 = vst.msk [vmem:[%s4214_s8 + $0x60] sm:$0xff] %vm2342_vm0, %v2338_v27  ;;  %v2339_v59 = vadd.f32 %v2551_v41, %v2316_v28 }
 0xa3d   : > { %v2318_v4 = vpop.xlane.xlu0 %2317 }
 0xa3e   : > { %2356 = vst.msk [vmem:[%s4214_s8 + $0x68] sm:$0xff] %vm2342_vm0, %v2339_v59  ;;  %v2340_v11 = vadd.f32 %v2551_v41, %v2318_v4 }
 0xa3f   : > { %v2320_v0 = vpop.xlane.xlu1 %2319 }
 0xa40   : > { %2357 = vst.msk [vmem:[%s4214_s8 + $0x70] sm:$0xff] %vm2342_vm0, %v2340_v11  ;;  %v2341_v15 = vadd.f32 %v2551_v41, %v2320_v0 }
 0xa42   : > { %2358 = vst.msk [vmem:[%s4214_s8 + $0x78] sm:$0xff] %vm2342_vm0, %v2341_v15 }
 0xa43 PF: > { %p15_p6 = scmp.ge.s32.totalorder %s3757_s9, 4   ;;  %s4278_s15 = smov %s3617_s16 }
 0xa44   : > { %s4279_s16 = smov %s3621_s17  ;;  %s4280_s17 = smov %s3766_s12 }
 0xa45   : > { %s4281_s18 = smov %s3757_s9  ;;  %17 = sbr.rel (!%p15_p6) target bundleno = 4 (0x4), region = 102 }
 0xa4c   :  { %2381 = vsyncpa [#allocation3], 1 }
 0xa4d   :  { %2383 = vsyncpa [#allocation3 + $0x1], 1 }
 0xa4e   :  { %2384 = vsyncpa [#allocation5], 1 }

</bundles_post_ra>
